<compile_context>
chip_gen: v7x
topology: tpu7x:2x2x1
jax: 0.10.0
libtpu: 0.0.40
codegen_flags: <defaults>
</compile_context>

<pallas_src>
import jax
import jax.numpy as jnp
from jax.experimental import pallas as pl
from jax.experimental.pallas import tpu as pltpu

INPUT_SIZE = 9
HIDDEN = 64
NUM_LAYERS = 2  # two-layer recurrence hard-coded in the fused kernel layout


def lstm_fused_kernel(x_ref,      # (T*B, D)        f32  time-major, flattened input
                      wx_ref,     # (D, 8H)         bf16 layer-0 input weights in fused cols
                      wrec_ref,   # (2H, 8H)        bf16 fused recurrent RHS
                      b0_ref,     # (1, 8H)         f32  layer-0 bias (layer-1 cols zero)
                      b2_ref,     # (1, 8H)         f32  layer-1 bias (layer-0 cols zero)
                      wfc_ref,    # (1, 2H)         f32  fc weight packed over [h1|h2] lanes
                      bfc_ref,    # (1, 1)          f32  fc bias
                      out_ref,    # (B, 1)          f32  sigmoid(fc(h2_last))
                      logit_ref,  # (B, 1)          f32  fc(h2_last) (pre-sigmoid, for testing)
                      xadd_ref):  # ((T+1)*B, 8H)   f32  VMEM scratch: per-wave additive term
    TB, _ = x_ref.shape
    B = out_ref.shape[0]
    T = TB // B
    H2 = wrec_ref.shape[0]        # 2H  (= 128): packed state width, one lane tile
    H8 = wrec_ref.shape[1]        # 8H  (= 512): fused gate width, 4 lane tiles

    # ---- Hoisted input projection: ONE (T*B, D) x (D, 8H) MXU matmul, off the serial path.
    # Stage the per-wave additive term through VMEM scratch to bound vreg live ranges:
    #   wave 0      : x[0] @ Wih0^T + b0              (no b2 -> h2/c2 of the fake step stay 0)
    #   wave 1..T-1 : x[w] @ Wih0^T + b0 + b2
    #   wave T      : b2 only                         (no layer-0 input; that half is dead)
    xproj = jnp.dot(x_ref[...].astype(jnp.bfloat16), wx_ref[...],
                    preferred_element_type=jnp.float32)
    b0 = b0_ref[...]
    b2 = b2_ref[...]
    xadd_ref[0:B, :] = xproj[0:B, :] + b0
    xadd_ref[B:TB, :] = xproj[B:TB, :] + (b0 + b2)
    xadd_ref[TB:TB + B, :] = jnp.broadcast_to(b2, (B, H8))

    # ---- Wave-skewed recurrence: one fused MXU op + one fused gate pass per wave.
    # Gate columns are [i0 i1 | f0 f1 | o0 o1 | g0 g1]; every slice below is a whole number of
    # 128-lane tiles (2H = 128) so no masked selects / lane shifts land on the serial path.
    hp = jnp.zeros((B, H2), jnp.float32)   # [h1 | h2] packed
    cp = jnp.zeros((B, H2), jnp.float32)   # [c1 | c2] packed
    for w in range(T + 1):                 # static unroll: adjacent waves can overlap in VLIW
        g = jnp.dot(hp.astype(jnp.bfloat16), wrec_ref[...],
                    preferred_element_type=jnp.float32) + xadd_ref[w * B:(w + 1) * B, :]
        sig = jax.nn.sigmoid(g[:, 0:3 * H2])      # one EUP batch: both layers' i, f, o
        tg = jnp.tanh(g[:, 3 * H2:4 * H2])        # one EUP batch: both layers' g
        i = sig[:, 0:H2]
        f = sig[:, H2:2 * H2]
        o = sig[:, 2 * H2:3 * H2]
        cp = f * cp + i * tg                      # both layers' cell update at once
        hp = o * jnp.tanh(cp)                     # -> [h1(w) | h2(w-1)]

    # ---- FC + sigmoid on h2 at the last timestep (the h2 half of hp after wave T).
    # VPU multiply + lane reduction; wfc is pre-packed with zeros over the h1 lanes.
    logits = jnp.sum(hp * wfc_ref[...], axis=-1, keepdims=True) + bfc_ref[...]
    logit_ref[...] = logits
    out_ref[...] = jax.nn.sigmoid(logits)


def lstm_model_forward(x, params):
    """x: (B, T, INPUT_SIZE) float32, batch_first like the PyTorch module.

    Returns (prob, logits): prob == sigmoid(fc(h2_last)) is the module output; logits is the
    pre-sigmoid value, exposed for a meaningful numerical self-test.
    """
    B, T, D = x.shape
    # Transpose AND reshape in the wrapper (free metadata in XLA, fuses into the HBM->VMEM
    # transfer) so the kernel never relayouts a 9-lane-minor 3-D block.
    x2d = jnp.transpose(x, (1, 0, 2)).reshape(T * B, D)
    H8 = params[1].shape[1]  # fused gate width (8H)
    prob, logits = pl.pallas_call(
        lstm_fused_kernel,
        out_shape=(jax.ShapeDtypeStruct((B, 1), jnp.float32),
                   jax.ShapeDtypeStruct((B, 1), jnp.float32)),
        in_specs=[pl.BlockSpec(memory_space=pltpu.MemorySpace.VMEM)] * (1 + len(params)),
        out_specs=(pl.BlockSpec(memory_space=pltpu.MemorySpace.VMEM),
                   pl.BlockSpec(memory_space=pltpu.MemorySpace.VMEM)),
        scratch_shapes=[pltpu.VMEM(((T + 1) * B, H8), jnp.float32)],
    )(x2d, *params)
    return prob, logits


def init_raw_params(key, input_size=INPUT_SIZE, hidden=HIDDEN):
    """PyTorch-shaped parameters, U(-1/sqrt(H), 1/sqrt(H)), gate row order [i, f, g, o]."""
    k = 1.0 / jnp.sqrt(jnp.float32(hidden))
    keys = jax.random.split(key, 10)

    def u(kk, shape):
        return jax.random.uniform(kk, shape, jnp.float32, -k, k)

    w_ih0 = u(keys[0], (4 * hidden, input_size))
    w_hh0 = u(keys[1], (4 * hidden, hidden))
    b_ih0 = u(keys[2], (4 * hidden,))
    b_hh0 = u(keys[3], (4 * hidden,))
    w_ih1 = u(keys[4], (4 * hidden, hidden))
    w_hh1 = u(keys[5], (4 * hidden, hidden))
    b_ih1 = u(keys[6], (4 * hidden,))
    b_hh1 = u(keys[7], (4 * hidden,))
    w_fc = u(keys[8], (1, hidden))
    b_fc = u(keys[9], (1,))
    return (w_ih0, w_hh0, b_ih0, b_hh0, w_ih1, w_hh1, b_ih1, b_hh1, w_fc, b_fc)


def prepare_params(w_ih0, w_hh0, b_ih0, b_hh0, w_ih1, w_hh1, b_ih1, b_hh1, w_fc, b_fc):
    """PyTorch layout -> fused wave-skew kernel layout.

    Gate columns are interleaved [i0 i1 | f0 f1 | o0 o1 | g0 g1] (each block H wide, each
    pair 2H = 128 lanes) so the kernel's sigmoid/tanh and cell-update slices are lane-tile
    aligned.  MXU weights are bf16; biases / fc stay f32.
    """
    H = w_hh0.shape[1]
    D = w_ih0.shape[1]

    def gate_rows(a):  # (4H, ...) grouped [i, f, g, o] along axis 0
        return a[0:H], a[H:2 * H], a[2 * H:3 * H], a[3 * H:4 * H]

    def tsplit(w):     # (4H, K) -> transposed gate blocks (i^T, f^T, g^T, o^T), each (K, H)
        i, f, g, o = gate_rows(w)
        return i.T, f.T, g.T, o.T

    def fuse_cols(l0, l1):
        i0, f0, g0, o0 = l0
        i1, f1, g1, o1 = l1
        return jnp.concatenate([i0, i1, f0, f1, o0, o1, g0, g1], axis=1)

    z_DH = jnp.zeros((D, H), jnp.float32)
    z_HH = jnp.zeros((H, H), jnp.float32)
    zH = jnp.zeros((H,), jnp.float32)

    # Layer-0 input-projection weights; layer-1 gate columns are zero.
    wx = fuse_cols(tsplit(w_ih0), (z_DH, z_DH, z_DH, z_DH)).astype(jnp.bfloat16)    # (D, 8H)

    # Fused recurrent RHS (2H, 8H): rows [0,H) multiply h1, rows [H,2H) multiply h2.
    top = fuse_cols(tsplit(w_hh0), tsplit(w_ih1))     # h1 feeds layer-0 AND layer-1 gates
    bot = fuse_cols((z_HH, z_HH, z_HH, z_HH), tsplit(w_hh1))   # h2 feeds layer-1 gates only
    wrec = jnp.concatenate([top, bot], axis=0).astype(jnp.bfloat16)                 # (2H, 8H)

    def fuse_bias(l0, l1):
        i0, f0, g0, o0 = l0
        i1, f1, g1, o1 = l1
        return jnp.concatenate([i0, i1, f0, f1, o0, o1, g0, g1], axis=0)[None, :]

    b0f = fuse_bias(gate_rows(b_ih0 + b_hh0), (zH, zH, zH, zH)).astype(jnp.float32)  # (1, 8H)
    b2f = fuse_bias((zH, zH, zH, zH), gate_rows(b_ih1 + b_hh1)).astype(jnp.float32)  # (1, 8H)

    # FC weight packed over the (B, 2H) state: zeros over the h1 half, w_fc over the h2 half.
    wfc_packed = jnp.concatenate([jnp.zeros((1, H), jnp.float32),
                                  w_fc.astype(jnp.float32)], axis=1)                 # (1, 2H)
    bfc = b_fc[None, :].astype(jnp.float32)                                          # (1, 1)
    return (wx, wrec, b0f, b2f, wfc_packed, bfc)


def reference_forward(x, raw):
    """Pure-f32 JAX reference with exact PyTorch LSTM semantics (gate order [i, f, g, o])."""
    (w_ih0, w_hh0, b_ih0, b_hh0, w_ih1, w_hh1, b_ih1, b_hh1, w_fc, b_fc) = raw
    B, T, _ = x.shape
    H = w_hh0.shape[1]

    def cell(x_t, h, c, w_ih, w_hh, b_ih, b_hh):
        g = x_t @ w_ih.T + h @ w_hh.T + b_ih + b_hh
        i = jax.nn.sigmoid(g[:, :H])
        f = jax.nn.sigmoid(g[:, H:2 * H])
        gg = jnp.tanh(g[:, 2 * H:3 * H])
        o = jax.nn.sigmoid(g[:, 3 * H:])
        c = f * c + i * gg
        return o * jnp.tanh(c), c

    h1 = c1 = h2 = c2 = jnp.zeros((B, H), jnp.float32)
    for t in range(T):
        h1, c1 = cell(x[:, t, :], h1, c1, w_ih0, w_hh0, b_ih0, b_hh0)
        h2, c2 = cell(h1, h2, c2, w_ih1, w_hh1, b_ih1, b_hh1)
    logits = h2 @ w_fc.T + b_fc
    return jax.nn.sigmoid(logits), logits


if __name__ == "__main__":
    key = jax.random.PRNGKey(0)
    kx, kp = jax.random.split(key)

    B, T = 8, 8
    x = jax.random.normal(kx, (B, T, INPUT_SIZE), jnp.float32)

    raw = init_raw_params(kp)
    params = prepare_params(*raw)

    prob, logits = lstm_model_forward(x, params)
    prob = jax.block_until_ready(prob)
    logits = jax.block_until_ready(logits)

    ref_prob, ref_logits = reference_forward(x, raw)
    assert prob.shape == (B, 1) and logits.shape == (B, 1)
    # Per the review's correctness note: compare PRE-sigmoid logits against the pure-f32
    # reference (sigmoid saturation makes the post-sigmoid check weak), plus the module output.
    assert jnp.allclose(logits, ref_logits, atol=5e-2, rtol=5e-2), "logit mismatch vs f32 ref"
    assert jnp.allclose(prob, ref_prob, atol=1e-2, rtol=1e-2), "prob mismatch vs f32 ref"

    print("KERNEL_OK")
</pallas_src>

<mosaic_0001>
module attributes {stable_mosaic.version = 11 : i64} {
  func.func @lstm_fused_kernel(%arg0: memref<64x9xf32, #tpu.memory_space<vmem>>, %arg1: memref<9x512xbf16, #tpu.memory_space<vmem>>, %arg2: memref<128x512xbf16, #tpu.memory_space<vmem>>, %arg3: memref<1x512xf32, #tpu.memory_space<vmem>>, %arg4: memref<1x512xf32, #tpu.memory_space<vmem>>, %arg5: memref<1x128xf32, #tpu.memory_space<vmem>>, %arg6: memref<1x1xf32, #tpu.memory_space<vmem>>, %arg7: memref<8x1xf32, #tpu.memory_space<vmem>>, %arg8: memref<8x1xf32, #tpu.memory_space<vmem>>, %arg9: memref<72x512xf32, #tpu.memory_space<vmem>>) attributes {dimension_semantics = [], scalar_prefetch = 0 : i64, scratch_operands = 1 : i64, tpu.core_type = #tpu.core_type<tc>} {
    %c0 = arith.constant 0 : index
    %c0_0 = arith.constant 0 : index
    %0 = vector.load %arg0[%c0, %c0_0] : memref<64x9xf32, #tpu.memory_space<vmem>>, vector<64x9xf32>
    %1 = arith.truncf %0 : vector<64x9xf32> to vector<64x9xbf16>
    %c0_1 = arith.constant 0 : index
    %c0_2 = arith.constant 0 : index
    %2 = vector.load %arg1[%c0_1, %c0_2] : memref<9x512xbf16, #tpu.memory_space<vmem>>, vector<9x512xbf16>
    %cst = arith.constant dense<0.000000e+00> : vector<64x512xf32>
    %3 = tpu.matmul %1, %2, %cst {dimension_numbers = #tpu.dot_dimension_numbers<[1], [0], [0], [1], [0, 0, 1, 1], [], []>} : vector<64x9xbf16>, vector<9x512xbf16>, vector<64x512xf32> -> vector<64x512xf32>
    %c0_3 = arith.constant 0 : index
    %c0_4 = arith.constant 0 : index
    %4 = vector.load %arg3[%c0_3, %c0_4] : memref<1x512xf32, #tpu.memory_space<vmem>>, vector<1x512xf32>
    %c0_5 = arith.constant 0 : index
    %c0_6 = arith.constant 0 : index
    %5 = vector.load %arg4[%c0_5, %c0_6] : memref<1x512xf32, #tpu.memory_space<vmem>>, vector<1x512xf32>
    %6 = vector.extract_strided_slice %3 {offsets = [0, 0], sizes = [8, 512], strides = [1, 1]} : vector<64x512xf32> to vector<8x512xf32>
    %7 = vector.broadcast %4 : vector<1x512xf32> to vector<8x512xf32>
    %8 = arith.addf %6, %7 : vector<8x512xf32>
    %c0_7 = arith.constant 0 : index
    %c0_8 = arith.constant 0 : index
    %9 = vector.load %arg9[%c0_7, %c0_8] : memref<72x512xf32, #tpu.memory_space<vmem>>, vector<8x512xf32>
    tpu.vector_store %arg9[%c0_7, %c0_8], %8 {strides = array<i32>} : memref<72x512xf32, #tpu.memory_space<vmem>>, vector<8x512xf32>,
    %10 = vector.extract_strided_slice %3 {offsets = [8, 0], sizes = [56, 512], strides = [1, 1]} : vector<64x512xf32> to vector<56x512xf32>
    %11 = arith.addf %4, %5 : vector<1x512xf32>
    %12 = vector.broadcast %11 : vector<1x512xf32> to vector<56x512xf32>
    %13 = arith.addf %10, %12 : vector<56x512xf32>
    %c8 = arith.constant 8 : index
    %c0_9 = arith.constant 0 : index
    %14 = vector.load %arg9[%c8, %c0_9] : memref<72x512xf32, #tpu.memory_space<vmem>>, vector<56x512xf32>
    tpu.vector_store %arg9[%c8, %c0_9], %13 {strides = array<i32>} : memref<72x512xf32, #tpu.memory_space<vmem>>, vector<56x512xf32>,
    %15 = vector.shape_cast %5 : vector<1x512xf32> to vector<1x512xf32>
    %16 = vector.broadcast %15 : vector<1x512xf32> to vector<8x512xf32>
    %c64 = arith.constant 64 : index
    %c0_10 = arith.constant 0 : index
    %17 = vector.load %arg9[%c64, %c0_10] : memref<72x512xf32, #tpu.memory_space<vmem>>, vector<8x512xf32>
    tpu.vector_store %arg9[%c64, %c0_10], %16 {strides = array<i32>} : memref<72x512xf32, #tpu.memory_space<vmem>>, vector<8x512xf32>,
    %cst_11 = arith.constant 0.000000e+00 : f32
    %18 = vector.broadcast %cst_11 : f32 to vector<8x128xf32>
    %cst_12 = arith.constant 0.000000e+00 : f32
    %19 = vector.broadcast %cst_12 : f32 to vector<8x128xf32>
    %20 = arith.truncf %18 : vector<8x128xf32> to vector<8x128xbf16>
    %c0_13 = arith.constant 0 : index
    %c0_14 = arith.constant 0 : index
    %21 = vector.load %arg2[%c0_13, %c0_14] : memref<128x512xbf16, #tpu.memory_space<vmem>>, vector<128x512xbf16>
    %cst_15 = arith.constant dense<0.000000e+00> : vector<8x512xf32>
    %22 = tpu.matmul %20, %21, %cst_15 {dimension_numbers = #tpu.dot_dimension_numbers<[1], [0], [0], [1], [0, 0, 1, 1], [], []>} : vector<8x128xbf16>, vector<128x512xbf16>, vector<8x512xf32> -> vector<8x512xf32>
    %c0_16 = arith.constant 0 : index
    %c0_17 = arith.constant 0 : index
    %23 = vector.load %arg9[%c0_16, %c0_17] : memref<72x512xf32, #tpu.memory_space<vmem>>, vector<8x512xf32>
    %24 = arith.addf %22, %23 : vector<8x512xf32>
    %25 = vector.extract_strided_slice %24 {offsets = [0, 0], sizes = [8, 384], strides = [1, 1]} : vector<8x512xf32> to vector<8x384xf32>
    %26 = arith.negf %25 : vector<8x384xf32>
    %27 = math.exp %26 : vector<8x384xf32>
    %cst_18 = arith.constant 1.000000e+00 : f32
    %28 = vector.broadcast %cst_18 : f32 to vector<8x384xf32>
    %29 = arith.addf %28, %27 : vector<8x384xf32>
    %30 = arith.divf %28, %29 : vector<8x384xf32>
    %31 = vector.extract_strided_slice %24 {offsets = [0, 384], sizes = [8, 128], strides = [1, 1]} : vector<8x512xf32> to vector<8x128xf32>
    %32 = math.tanh %31 : vector<8x128xf32>
    %33 = vector.extract_strided_slice %30 {offsets = [0, 0], sizes = [8, 128], strides = [1, 1]} : vector<8x384xf32> to vector<8x128xf32>
    %34 = vector.extract_strided_slice %30 {offsets = [0, 128], sizes = [8, 128], strides = [1, 1]} : vector<8x384xf32> to vector<8x128xf32>
    %35 = vector.extract_strided_slice %30 {offsets = [0, 256], sizes = [8, 128], strides = [1, 1]} : vector<8x384xf32> to vector<8x128xf32>
    %36 = arith.mulf %34, %19 : vector<8x128xf32>
    %37 = arith.mulf %33, %32 : vector<8x128xf32>
    %38 = arith.addf %36, %37 : vector<8x128xf32>
    %39 = math.tanh %38 : vector<8x128xf32>
    %40 = arith.mulf %35, %39 : vector<8x128xf32>
    %41 = arith.truncf %40 : vector<8x128xf32> to vector<8x128xbf16>
    %c0_19 = arith.constant 0 : index
    %c0_20 = arith.constant 0 : index
    %42 = vector.load %arg2[%c0_19, %c0_20] : memref<128x512xbf16, #tpu.memory_space<vmem>>, vector<128x512xbf16>
    %cst_21 = arith.constant dense<0.000000e+00> : vector<8x512xf32>
    %43 = tpu.matmul %41, %42, %cst_21 {dimension_numbers = #tpu.dot_dimension_numbers<[1], [0], [0], [1], [0, 0, 1, 1], [], []>} : vector<8x128xbf16>, vector<128x512xbf16>, vector<8x512xf32> -> vector<8x512xf32>
    %c8_22 = arith.constant 8 : index
    %c0_23 = arith.constant 0 : index
    %44 = vector.load %arg9[%c8_22, %c0_23] : memref<72x512xf32, #tpu.memory_space<vmem>>, vector<8x512xf32>
    %45 = arith.addf %43, %44 : vector<8x512xf32>
    %46 = vector.extract_strided_slice %45 {offsets = [0, 0], sizes = [8, 384], strides = [1, 1]} : vector<8x512xf32> to vector<8x384xf32>
    %47 = arith.negf %46 : vector<8x384xf32>
    %48 = math.exp %47 : vector<8x384xf32>
    %cst_24 = arith.constant 1.000000e+00 : f32
    %49 = vector.broadcast %cst_24 : f32 to vector<8x384xf32>
    %50 = arith.addf %49, %48 : vector<8x384xf32>
    %51 = arith.divf %49, %50 : vector<8x384xf32>
    %52 = vector.extract_strided_slice %45 {offsets = [0, 384], sizes = [8, 128], strides = [1, 1]} : vector<8x512xf32> to vector<8x128xf32>
    %53 = math.tanh %52 : vector<8x128xf32>
    %54 = vector.extract_strided_slice %51 {offsets = [0, 0], sizes = [8, 128], strides = [1, 1]} : vector<8x384xf32> to vector<8x128xf32>
    %55 = vector.extract_strided_slice %51 {offsets = [0, 128], sizes = [8, 128], strides = [1, 1]} : vector<8x384xf32> to vector<8x128xf32>
    %56 = vector.extract_strided_slice %51 {offsets = [0, 256], sizes = [8, 128], strides = [1, 1]} : vector<8x384xf32> to vector<8x128xf32>
    %57 = arith.mulf %55, %38 : vector<8x128xf32>
    %58 = arith.mulf %54, %53 : vector<8x128xf32>
    %59 = arith.addf %57, %58 : vector<8x128xf32>
    %60 = math.tanh %59 : vector<8x128xf32>
    %61 = arith.mulf %56, %60 : vector<8x128xf32>
    %62 = arith.truncf %61 : vector<8x128xf32> to vector<8x128xbf16>
    %c0_25 = arith.constant 0 : index
    %c0_26 = arith.constant 0 : index
    %63 = vector.load %arg2[%c0_25, %c0_26] : memref<128x512xbf16, #tpu.memory_space<vmem>>, vector<128x512xbf16>
    %cst_27 = arith.constant dense<0.000000e+00> : vector<8x512xf32>
    %64 = tpu.matmul %62, %63, %cst_27 {dimension_numbers = #tpu.dot_dimension_numbers<[1], [0], [0], [1], [0, 0, 1, 1], [], []>} : vector<8x128xbf16>, vector<128x512xbf16>, vector<8x512xf32> -> vector<8x512xf32>
    %c16 = arith.constant 16 : index
    %c0_28 = arith.constant 0 : index
    %65 = vector.load %arg9[%c16, %c0_28] : memref<72x512xf32, #tpu.memory_space<vmem>>, vector<8x512xf32>
    %66 = arith.addf %64, %65 : vector<8x512xf32>
    %67 = vector.extract_strided_slice %66 {offsets = [0, 0], sizes = [8, 384], strides = [1, 1]} : vector<8x512xf32> to vector<8x384xf32>
    %68 = arith.negf %67 : vector<8x384xf32>
    %69 = math.exp %68 : vector<8x384xf32>
    %cst_29 = arith.constant 1.000000e+00 : f32
    %70 = vector.broadcast %cst_29 : f32 to vector<8x384xf32>
    %71 = arith.addf %70, %69 : vector<8x384xf32>
    %72 = arith.divf %70, %71 : vector<8x384xf32>
    %73 = vector.extract_strided_slice %66 {offsets = [0, 384], sizes = [8, 128], strides = [1, 1]} : vector<8x512xf32> to vector<8x128xf32>
    %74 = math.tanh %73 : vector<8x128xf32>
    %75 = vector.extract_strided_slice %72 {offsets = [0, 0], sizes = [8, 128], strides = [1, 1]} : vector<8x384xf32> to vector<8x128xf32>
    %76 = vector.extract_strided_slice %72 {offsets = [0, 128], sizes = [8, 128], strides = [1, 1]} : vector<8x384xf32> to vector<8x128xf32>
    %77 = vector.extract_strided_slice %72 {offsets = [0, 256], sizes = [8, 128], strides = [1, 1]} : vector<8x384xf32> to vector<8x128xf32>
    %78 = arith.mulf %76, %59 : vector<8x128xf32>
    %79 = arith.mulf %75, %74 : vector<8x128xf32>
    %80 = arith.addf %78, %79 : vector<8x128xf32>
    %81 = math.tanh %80 : vector<8x128xf32>
    %82 = arith.mulf %77, %81 : vector<8x128xf32>
    %83 = arith.truncf %82 : vector<8x128xf32> to vector<8x128xbf16>
    %c0_30 = arith.constant 0 : index
    %c0_31 = arith.constant 0 : index
    %84 = vector.load %arg2[%c0_30, %c0_31] : memref<128x512xbf16, #tpu.memory_space<vmem>>, vector<128x512xbf16>
    %cst_32 = arith.constant dense<0.000000e+00> : vector<8x512xf32>
    %85 = tpu.matmul %83, %84, %cst_32 {dimension_numbers = #tpu.dot_dimension_numbers<[1], [0], [0], [1], [0, 0, 1, 1], [], []>} : vector<8x128xbf16>, vector<128x512xbf16>, vector<8x512xf32> -> vector<8x512xf32>
    %c24 = arith.constant 24 : index
    %c0_33 = arith.constant 0 : index
    %86 = vector.load %arg9[%c24, %c0_33] : memref<72x512xf32, #tpu.memory_space<vmem>>, vector<8x512xf32>
    %87 = arith.addf %85, %86 : vector<8x512xf32>
    %88 = vector.extract_strided_slice %87 {offsets = [0, 0], sizes = [8, 384], strides = [1, 1]} : vector<8x512xf32> to vector<8x384xf32>
    %89 = arith.negf %88 : vector<8x384xf32>
    %90 = math.exp %89 : vector<8x384xf32>
    %cst_34 = arith.constant 1.000000e+00 : f32
    %91 = vector.broadcast %cst_34 : f32 to vector<8x384xf32>
    %92 = arith.addf %91, %90 : vector<8x384xf32>
    %93 = arith.divf %91, %92 : vector<8x384xf32>
    %94 = vector.extract_strided_slice %87 {offsets = [0, 384], sizes = [8, 128], strides = [1, 1]} : vector<8x512xf32> to vector<8x128xf32>
    %95 = math.tanh %94 : vector<8x128xf32>
    %96 = vector.extract_strided_slice %93 {offsets = [0, 0], sizes = [8, 128], strides = [1, 1]} : vector<8x384xf32> to vector<8x128xf32>
    %97 = vector.extract_strided_slice %93 {offsets = [0, 128], sizes = [8, 128], strides = [1, 1]} : vector<8x384xf32> to vector<8x128xf32>
    %98 = vector.extract_strided_slice %93 {offsets = [0, 256], sizes = [8, 128], strides = [1, 1]} : vector<8x384xf32> to vector<8x128xf32>
    %99 = arith.mulf %97, %80 : vector<8x128xf32>
    %100 = arith.mulf %96, %95 : vector<8x128xf32>
    %101 = arith.addf %99, %100 : vector<8x128xf32>
    %102 = math.tanh %101 : vector<8x128xf32>
    %103 = arith.mulf %98, %102 : vector<8x128xf32>
    %104 = arith.truncf %103 : vector<8x128xf32> to vector<8x128xbf16>
    %c0_35 = arith.constant 0 : index
    %c0_36 = arith.constant 0 : index
    %105 = vector.load %arg2[%c0_35, %c0_36] : memref<128x512xbf16, #tpu.memory_space<vmem>>, vector<128x512xbf16>
    %cst_37 = arith.constant dense<0.000000e+00> : vector<8x512xf32>
    %106 = tpu.matmul %104, %105, %cst_37 {dimension_numbers = #tpu.dot_dimension_numbers<[1], [0], [0], [1], [0, 0, 1, 1], [], []>} : vector<8x128xbf16>, vector<128x512xbf16>, vector<8x512xf32> -> vector<8x512xf32>
    %c32 = arith.constant 32 : index
    %c0_38 = arith.constant 0 : index
    %107 = vector.load %arg9[%c32, %c0_38] : memref<72x512xf32, #tpu.memory_space<vmem>>, vector<8x512xf32>
    %108 = arith.addf %106, %107 : vector<8x512xf32>
    %109 = vector.extract_strided_slice %108 {offsets = [0, 0], sizes = [8, 384], strides = [1, 1]} : vector<8x512xf32> to vector<8x384xf32>
    %110 = arith.negf %109 : vector<8x384xf32>
    %111 = math.exp %110 : vector<8x384xf32>
    %cst_39 = arith.constant 1.000000e+00 : f32
    %112 = vector.broadcast %cst_39 : f32 to vector<8x384xf32>
    %113 = arith.addf %112, %111 : vector<8x384xf32>
    %114 = arith.divf %112, %113 : vector<8x384xf32>
    %115 = vector.extract_strided_slice %108 {offsets = [0, 384], sizes = [8, 128], strides = [1, 1]} : vector<8x512xf32> to vector<8x128xf32>
    %116 = math.tanh %115 : vector<8x128xf32>
    %117 = vector.extract_strided_slice %114 {offsets = [0, 0], sizes = [8, 128], strides = [1, 1]} : vector<8x384xf32> to vector<8x128xf32>
    %118 = vector.extract_strided_slice %114 {offsets = [0, 128], sizes = [8, 128], strides = [1, 1]} : vector<8x384xf32> to vector<8x128xf32>
    %119 = vector.extract_strided_slice %114 {offsets = [0, 256], sizes = [8, 128], strides = [1, 1]} : vector<8x384xf32> to vector<8x128xf32>
    %120 = arith.mulf %118, %101 : vector<8x128xf32>
    %121 = arith.mulf %117, %116 : vector<8x128xf32>
    %122 = arith.addf %120, %121 : vector<8x128xf32>
    %123 = math.tanh %122 : vector<8x128xf32>
    %124 = arith.mulf %119, %123 : vector<8x128xf32>
    %125 = arith.truncf %124 : vector<8x128xf32> to vector<8x128xbf16>
    %c0_40 = arith.constant 0 : index
    %c0_41 = arith.constant 0 : index
    %126 = vector.load %arg2[%c0_40, %c0_41] : memref<128x512xbf16, #tpu.memory_space<vmem>>, vector<128x512xbf16>
    %cst_42 = arith.constant dense<0.000000e+00> : vector<8x512xf32>
    %127 = tpu.matmul %125, %126, %cst_42 {dimension_numbers = #tpu.dot_dimension_numbers<[1], [0], [0], [1], [0, 0, 1, 1], [], []>} : vector<8x128xbf16>, vector<128x512xbf16>, vector<8x512xf32> -> vector<8x512xf32>
    %c40 = arith.constant 40 : index
    %c0_43 = arith.constant 0 : index
    %128 = vector.load %arg9[%c40, %c0_43] : memref<72x512xf32, #tpu.memory_space<vmem>>, vector<8x512xf32>
    %129 = arith.addf %127, %128 : vector<8x512xf32>
    %130 = vector.extract_strided_slice %129 {offsets = [0, 0], sizes = [8, 384], strides = [1, 1]} : vector<8x512xf32> to vector<8x384xf32>
    %131 = arith.negf %130 : vector<8x384xf32>
    %132 = math.exp %131 : vector<8x384xf32>
    %cst_44 = arith.constant 1.000000e+00 : f32
    %133 = vector.broadcast %cst_44 : f32 to vector<8x384xf32>
    %134 = arith.addf %133, %132 : vector<8x384xf32>
    %135 = arith.divf %133, %134 : vector<8x384xf32>
    %136 = vector.extract_strided_slice %129 {offsets = [0, 384], sizes = [8, 128], strides = [1, 1]} : vector<8x512xf32> to vector<8x128xf32>
    %137 = math.tanh %136 : vector<8x128xf32>
    %138 = vector.extract_strided_slice %135 {offsets = [0, 0], sizes = [8, 128], strides = [1, 1]} : vector<8x384xf32> to vector<8x128xf32>
    %139 = vector.extract_strided_slice %135 {offsets = [0, 128], sizes = [8, 128], strides = [1, 1]} : vector<8x384xf32> to vector<8x128xf32>
    %140 = vector.extract_strided_slice %135 {offsets = [0, 256], sizes = [8, 128], strides = [1, 1]} : vector<8x384xf32> to vector<8x128xf32>
    %141 = arith.mulf %139, %122 : vector<8x128xf32>
    %142 = arith.mulf %138, %137 : vector<8x128xf32>
    %143 = arith.addf %141, %142 : vector<8x128xf32>
    %144 = math.tanh %143 : vector<8x128xf32>
    %145 = arith.mulf %140, %144 : vector<8x128xf32>
    %146 = arith.truncf %145 : vector<8x128xf32> to vector<8x128xbf16>
    %c0_45 = arith.constant 0 : index
    %c0_46 = arith.constant 0 : index
    %147 = vector.load %arg2[%c0_45, %c0_46] : memref<128x512xbf16, #tpu.memory_space<vmem>>, vector<128x512xbf16>
    %cst_47 = arith.constant dense<0.000000e+00> : vector<8x512xf32>
    %148 = tpu.matmul %146, %147, %cst_47 {dimension_numbers = #tpu.dot_dimension_numbers<[1], [0], [0], [1], [0, 0, 1, 1], [], []>} : vector<8x128xbf16>, vector<128x512xbf16>, vector<8x512xf32> -> vector<8x512xf32>
    %c48 = arith.constant 48 : index
    %c0_48 = arith.constant 0 : index
    %149 = vector.load %arg9[%c48, %c0_48] : memref<72x512xf32, #tpu.memory_space<vmem>>, vector<8x512xf32>
    %150 = arith.addf %148, %149 : vector<8x512xf32>
    %151 = vector.extract_strided_slice %150 {offsets = [0, 0], sizes = [8, 384], strides = [1, 1]} : vector<8x512xf32> to vector<8x384xf32>
    %152 = arith.negf %151 : vector<8x384xf32>
    %153 = math.exp %152 : vector<8x384xf32>
    %cst_49 = arith.constant 1.000000e+00 : f32
    %154 = vector.broadcast %cst_49 : f32 to vector<8x384xf32>
    %155 = arith.addf %154, %153 : vector<8x384xf32>
    %156 = arith.divf %154, %155 : vector<8x384xf32>
    %157 = vector.extract_strided_slice %150 {offsets = [0, 384], sizes = [8, 128], strides = [1, 1]} : vector<8x512xf32> to vector<8x128xf32>
    %158 = math.tanh %157 : vector<8x128xf32>
    %159 = vector.extract_strided_slice %156 {offsets = [0, 0], sizes = [8, 128], strides = [1, 1]} : vector<8x384xf32> to vector<8x128xf32>
    %160 = vector.extract_strided_slice %156 {offsets = [0, 128], sizes = [8, 128], strides = [1, 1]} : vector<8x384xf32> to vector<8x128xf32>
    %161 = vector.extract_strided_slice %156 {offsets = [0, 256], sizes = [8, 128], strides = [1, 1]} : vector<8x384xf32> to vector<8x128xf32>
    %162 = arith.mulf %160, %143 : vector<8x128xf32>
    %163 = arith.mulf %159, %158 : vector<8x128xf32>
    %164 = arith.addf %162, %163 : vector<8x128xf32>
    %165 = math.tanh %164 : vector<8x128xf32>
    %166 = arith.mulf %161, %165 : vector<8x128xf32>
    %167 = arith.truncf %166 : vector<8x128xf32> to vector<8x128xbf16>
    %c0_50 = arith.constant 0 : index
    %c0_51 = arith.constant 0 : index
    %168 = vector.load %arg2[%c0_50, %c0_51] : memref<128x512xbf16, #tpu.memory_space<vmem>>, vector<128x512xbf16>
    %cst_52 = arith.constant dense<0.000000e+00> : vector<8x512xf32>
    %169 = tpu.matmul %167, %168, %cst_52 {dimension_numbers = #tpu.dot_dimension_numbers<[1], [0], [0], [1], [0, 0, 1, 1], [], []>} : vector<8x128xbf16>, vector<128x512xbf16>, vector<8x512xf32> -> vector<8x512xf32>
    %c56 = arith.constant 56 : index
    %c0_53 = arith.constant 0 : index
    %170 = vector.load %arg9[%c56, %c0_53] : memref<72x512xf32, #tpu.memory_space<vmem>>, vector<8x512xf32>
    %171 = arith.addf %169, %170 : vector<8x512xf32>
    %172 = vector.extract_strided_slice %171 {offsets = [0, 0], sizes = [8, 384], strides = [1, 1]} : vector<8x512xf32> to vector<8x384xf32>
    %173 = arith.negf %172 : vector<8x384xf32>
    %174 = math.exp %173 : vector<8x384xf32>
    %cst_54 = arith.constant 1.000000e+00 : f32
    %175 = vector.broadcast %cst_54 : f32 to vector<8x384xf32>
    %176 = arith.addf %175, %174 : vector<8x384xf32>
    %177 = arith.divf %175, %176 : vector<8x384xf32>
    %178 = vector.extract_strided_slice %171 {offsets = [0, 384], sizes = [8, 128], strides = [1, 1]} : vector<8x512xf32> to vector<8x128xf32>
    %179 = math.tanh %178 : vector<8x128xf32>
    %180 = vector.extract_strided_slice %177 {offsets = [0, 0], sizes = [8, 128], strides = [1, 1]} : vector<8x384xf32> to vector<8x128xf32>
    %181 = vector.extract_strided_slice %177 {offsets = [0, 128], sizes = [8, 128], strides = [1, 1]} : vector<8x384xf32> to vector<8x128xf32>
    %182 = vector.extract_strided_slice %177 {offsets = [0, 256], sizes = [8, 128], strides = [1, 1]} : vector<8x384xf32> to vector<8x128xf32>
    %183 = arith.mulf %181, %164 : vector<8x128xf32>
    %184 = arith.mulf %180, %179 : vector<8x128xf32>
    %185 = arith.addf %183, %184 : vector<8x128xf32>
    %186 = math.tanh %185 : vector<8x128xf32>
    %187 = arith.mulf %182, %186 : vector<8x128xf32>
    %188 = arith.truncf %187 : vector<8x128xf32> to vector<8x128xbf16>
    %c0_55 = arith.constant 0 : index
    %c0_56 = arith.constant 0 : index
    %189 = vector.load %arg2[%c0_55, %c0_56] : memref<128x512xbf16, #tpu.memory_space<vmem>>, vector<128x512xbf16>
    %cst_57 = arith.constant dense<0.000000e+00> : vector<8x512xf32>
    %190 = tpu.matmul %188, %189, %cst_57 {dimension_numbers = #tpu.dot_dimension_numbers<[1], [0], [0], [1], [0, 0, 1, 1], [], []>} : vector<8x128xbf16>, vector<128x512xbf16>, vector<8x512xf32> -> vector<8x512xf32>
    %c64_58 = arith.constant 64 : index
    %c0_59 = arith.constant 0 : index
    %191 = vector.load %arg9[%c64_58, %c0_59] : memref<72x512xf32, #tpu.memory_space<vmem>>, vector<8x512xf32>
    %192 = arith.addf %190, %191 : vector<8x512xf32>
    %193 = vector.extract_strided_slice %192 {offsets = [0, 0], sizes = [8, 384], strides = [1, 1]} : vector<8x512xf32> to vector<8x384xf32>
    %194 = arith.negf %193 : vector<8x384xf32>
    %195 = math.exp %194 : vector<8x384xf32>
    %cst_60 = arith.constant 1.000000e+00 : f32
    %196 = vector.broadcast %cst_60 : f32 to vector<8x384xf32>
    %197 = arith.addf %196, %195 : vector<8x384xf32>
    %198 = arith.divf %196, %197 : vector<8x384xf32>
    %199 = vector.extract_strided_slice %192 {offsets = [0, 384], sizes = [8, 128], strides = [1, 1]} : vector<8x512xf32> to vector<8x128xf32>
    %200 = math.tanh %199 : vector<8x128xf32>
    %201 = vector.extract_strided_slice %198 {offsets = [0, 0], sizes = [8, 128], strides = [1, 1]} : vector<8x384xf32> to vector<8x128xf32>
    %202 = vector.extract_strided_slice %198 {offsets = [0, 128], sizes = [8, 128], strides = [1, 1]} : vector<8x384xf32> to vector<8x128xf32>
    %203 = vector.extract_strided_slice %198 {offsets = [0, 256], sizes = [8, 128], strides = [1, 1]} : vector<8x384xf32> to vector<8x128xf32>
    %204 = arith.mulf %202, %185 : vector<8x128xf32>
    %205 = arith.mulf %201, %200 : vector<8x128xf32>
    %206 = arith.addf %204, %205 : vector<8x128xf32>
    %207 = math.tanh %206 : vector<8x128xf32>
    %208 = arith.mulf %203, %207 : vector<8x128xf32>
    %c0_61 = arith.constant 0 : index
    %c0_62 = arith.constant 0 : index
    %209 = vector.load %arg5[%c0_61, %c0_62] : memref<1x128xf32, #tpu.memory_space<vmem>>, vector<1x128xf32>
    %210 = vector.broadcast %209 : vector<1x128xf32> to vector<8x128xf32>
    %211 = arith.mulf %208, %210 : vector<8x128xf32>
    %cst_63 = arith.constant dense<0.000000e+00> : vector<8xf32>
    %212 = vector.multi_reduction <add>, %211, %cst_63 [1] : vector<8x128xf32> to vector<8xf32>
    %213 = vector.shape_cast %212 : vector<8xf32> to vector<8x1xf32>
    %c0_64 = arith.constant 0 : index
    %c0_65 = arith.constant 0 : index
    %214 = vector.load %arg6[%c0_64, %c0_65] : memref<1x1xf32, #tpu.memory_space<vmem>>, vector<1x1xf32>
    %215 = vector.broadcast %214 : vector<1x1xf32> to vector<8x1xf32>
    %216 = arith.addf %213, %215 : vector<8x1xf32>
    %c0_66 = arith.constant 0 : index
    %c0_67 = arith.constant 0 : index
    %217 = vector.load %arg8[%c0_66, %c0_67] : memref<8x1xf32, #tpu.memory_space<vmem>>, vector<8x1xf32>
    tpu.vector_store %arg8[%c0_66, %c0_67], %216 {strides = array<i32>} : memref<8x1xf32, #tpu.memory_space<vmem>>, vector<8x1xf32>,
    %218 = arith.negf %216 : vector<8x1xf32>
    %219 = math.exp %218 : vector<8x1xf32>
    %cst_68 = arith.constant 1.000000e+00 : f32
    %220 = vector.broadcast %cst_68 : f32 to vector<8x1xf32>
    %221 = arith.addf %220, %219 : vector<8x1xf32>
    %222 = arith.divf %220, %221 : vector<8x1xf32>
    %c0_69 = arith.constant 0 : index
    %c0_70 = arith.constant 0 : index
    %223 = vector.load %arg7[%c0_69, %c0_70] : memref<8x1xf32, #tpu.memory_space<vmem>>, vector<8x1xf32>
    tpu.vector_store %arg7[%c0_69, %c0_70], %222 {strides = array<i32>} : memref<8x1xf32, #tpu.memory_space<vmem>>, vector<8x1xf32>,
    return
  }
}

</mosaic_0001>

<bundles_post_ra>
// kernel: tpu_custom_call.1
= control target key start
LH: loop header
LB: loop body
LE: loop exit
PB: predicated region body
PF: predicated region fallthrough
CT: control target
= control target key end

     0   :  { %s2681_s0 = inlined_call_operand.vmem [shape: f32[64,9], index: 0, kind: input, shape index: {}]   ;;  %s2682_s1 = inlined_call_operand.vmem [shape: bf16[9,512], index: 1, kind: input, shape index: {}]   ;;  %s2683_s2 = inlined_call_operand.hbm [shape: bf16[128,512], index: 2, kind: input, shape index: {}]   ;;  %s2684_s3 = inlined_call_operand.vmem [shape: f32[1,512], index: 3, kind: input, shape index: {}]   ;;  %s2685_s4 = inlined_call_operand.vmem [shape: f32[1,512], index: 4, kind: input, shape index: {}]   ;;  %s2686_s5 = inlined_call_operand.vmem [shape: f32[1,128], index: 5, kind: input, shape index: {}]   ;;  %s2687_s6 = inlined_call_operand.<no memory space> [shape: f32[1,1], index: 6, kind: input, shape index: {}]   ;;  %s2688_s7 = inlined_call_operand.vmem [shape: f32[8,1], index: 7, kind: output, shape index: {0}]   ;;  %s2689_s8 = inlined_call_operand.vmem [shape: f32[8,1], index: 8, kind: output, shape index: {1}]  }
   0x1   :  { %v14_v0 = vstv %s2687_s6 }
   0x2   :  { %15 = vst [vmem:[#allocation3] sm:$0x1] %v14_v0 }
   0x3   :  { %16 = vsyncpa [#allocation5], 0  ;;  %s1950_s29 = smov [#allocation4]   ;;  %s1926_s11 = scalar_lea.hbm %s2683_s2, 4096 }
   0x4   :  { %s26_s30 = sshll.u32 %s1950_s29, 4  ;;  %p1927_p0 = scmp.ne.s32.totalorder %s2683_s2, %s1926_s11  ;;  %s27_s30 = int_to_ptr.vmem [resolvable:$true] %s26_s30 }
   0x5   :  { %p1930_p1 = scmp.lt.u32.totalorder %s1926_s11, %s2683_s2 }
   0x7   :  { %p1932_p2 = pnand %p1930_p1, %p1927_p0 }
   0x9   :  { %1935 = shalt.err (!%p1932_p2)
}
   0xa   :  { %s1936_s6 = scalar_lea.vmem %s27_s30, 4096  ;;  %p1941_p4 = scmp.lt.s32.totalorder %s27_s30, %s27_s30 }
   0xb   :  { %p1937_p3 = scmp.ne.s32.totalorder %s27_s30, %s1936_s6  ;;  %p1942_p5 = scmp.lt.s32.totalorder %s1936_s6, %s1936_s6 }
   0xd   :  { %p1943_p6 = por %p1942_p5, %p1941_p4 }
   0xf   :  { %p1944_p7 = pnand %p1943_p6, %p1937_p3 }
  0x11   :  { %1947 = shalt.err (!%p1944_p7)
}
  0x12   :  { %s1951_s16 = smov 256   ;;  %s1952_s17 = smov 16  }
  0x13   :  { %32 = dma.hbm_to_vmem [thread:$0]  %s2683_s2, 4096, %s27_s30, [#allocation5], %s1951_s16, %s1951_s16, %s1952_s17  }
  0x14   :  { %1948 = dma.done.wait [#allocation5], 4096  }
  0x15   :  { %1949 = vsyncadd [#allocation5], 4294963200  ;;  %vm90_vm0 = vcmask 1043456   ;;  %v2690_v1 = vmov 0   ;;  %vm91_vm1 = vcmask 1044480   ;;  %v1954_v2 = vmov 65535  }
  0x16   :  { %138 = vmatprep.mubr.bf16.mxu0 %v2690_v1  ;;  %211 = vmatprep.mubr.bf16.mxu1 %v2690_v1  ;;  %v92_v3 = vsel %vm90_vm0, 4294967295, %v1954_v2  ;;  %v1691_v5 = vld [vmem:[%s2682_s1 + $0x4] ss:$16 sps:$4 sm:$0x1f]   ;;  %v46_v12 = vld [vmem:[%s2681_s0 + $0x8] sm:$0xff]  ;;  %vm77_vm2 = vcmask 72704   ;;  %v255_v57 = vlaneseq }
  0x17   :  { %v93_v4 = vsel %vm91_vm1, %v92_v3, 0  ;;  %v1693_v6 = vld [vmem:[%s2682_s1 + $0xc] ss:$16 sps:$4 sm:$0x1f]   ;;  %v45_v11 = vld [vmem:[%s2681_s0] sm:$0xff]  ;;  %v47_v24 = vld [vmem:[%s2681_s0 + $0x10] sm:$0xff] }
  0x18   :  { %v98_v7 = vand.u32 %v1691_v5, %v93_v4  ;;  %v1695_v8 = vld [vmem:[%s2682_s1] ss:$16 sps:$4 sm:$0x1f]   ;;  %v1696_v9 = vld [vmem:[%s2682_s1 + $0x8] ss:$16 sps:$4 sm:$0x1f]   ;;  %v104_v10 = vand.u32 %v1693_v6, %v93_v4  ;;  %v53_v16 = vpack.c.bf16 %v46_v12, %v45_v11 }
  0x19   :  { %v95_v13 = vand.u32 %v1695_v8, %v93_v4  ;;  %v101_v14 = vand.u32 %v1696_v9, %v93_v4  ;;  %v2035_v15 = vld [vmem:[#allocation4 + $0x4] ss:$16 sps:$4 sm:$0xff]   ;;  %v2037_v17 = vld [vmem:[#allocation4 + $0xc] ss:$16 sps:$4 sm:$0xff]   ;;  %v2039_v18 = vld [vmem:[#allocation4] ss:$16 sps:$4 sm:$0xff]  }
  0x1a   :  { %106 = vmatprep.subr.bf16.mxu0 %v98_v7  ;;  %179 = vmatprep.subr.bf16.mxu1 %v104_v10  ;;  %v2041_v19 = vld [vmem:[#allocation4 + $0x8] ss:$16 sps:$4 sm:$0xff]   ;;  %v2045_v20 = vld [vmem:[#allocation4 + $0x24] ss:$16 sps:$4 sm:$0xff]   ;;  %v2047_v21 = vld [vmem:[#allocation4 + $0x2c] ss:$16 sps:$4 sm:$0xff]  }
  0x1b   :  { %107 = vmatpush1.bf16.msra.mxu0 %v95_v13  ;;  %180 = vmatpush1.bf16.msra.mxu1 %v101_v14  ;;  %v2049_v22 = vld [vmem:[#allocation4 + $0x20] ss:$16 sps:$4 sm:$0xff]   ;;  %v2053_v23 = vld [vmem:[#allocation4 + $0x28] ss:$16 sps:$4 sm:$0xff]   ;;  %v2065_v26 = vld [vmem:[#allocation4 + $0x44] ss:$16 sps:$4 sm:$0xff]  }
  0x1c   :  { %582 = vmatprep.subr.bf16.mxu0 %v2035_v15  ;;  %623 = vmatprep.subr.bf16.mxu1 %v2037_v17  ;;  %v48_v25 = vld [vmem:[%s2681_s0 + $0x18] sm:$0xff]  ;;  %v2073_v29 = vld [vmem:[#allocation4 + $0x40] ss:$16 sps:$4 sm:$0xff]   ;;  %v50_v36 = vld [vmem:[%s2681_s0 + $0x28] sm:$0xff]  ;;  %v256_v60 = vshrl.u32 %v255_v57, 7  ;;  %vm1594_vm3 = vcmask 7168  }
  0x1d   :  { %v2067_v27 = vld [vmem:[#allocation4 + $0x4c] ss:$16 sps:$4 sm:$0xff]   ;;  %v54_v28 = vpack.c.bf16 %v48_v25, %v47_v24  ;;  %v2075_v30 = vld [vmem:[#allocation4 + $0x48] ss:$16 sps:$4 sm:$0xff]   ;;  %v2079_v31 = vld [vmem:[#allocation4 + $0x64] ss:$16 sps:$4 sm:$0xff]  }
  0x1e   :  { %1616 = vmatmul.mubr.msk.bf16.vlgmr.msra.gmra.mrb[0].mxu0 %vm77_vm2, %v53_v16  ;;  %1620 = vmatmul.mubr.msk.bf16.vlgmr.msra.gmra.mrb[0].mxu1 %vm77_vm2, %v53_v16  ;;  %v2081_v32 = vld [vmem:[#allocation4 + $0x6c] ss:$16 sps:$4 sm:$0xff]   ;;  %v2083_v33 = vld [vmem:[#allocation4 + $0x60] ss:$16 sps:$4 sm:$0xff]   ;;  %v2085_v34 = vld [vmem:[#allocation4 + $0x68] ss:$16 sps:$4 sm:$0xff]  }
  0x1f   :  { %583 = vmatpush1.bf16.msra.mxu0 %v2039_v18  ;;  %624 = vmatpush1.bf16.msra.mxu1 %v2041_v19  ;;  %v49_v35 = vld [vmem:[%s2681_s0 + $0x20] sm:$0xff]  ;;  %v2109_v41 = vld [vmem:[#allocation4 + $0x88] ss:$16 sps:$4 sm:$0xff]   ;;  %v51_v46 = vld [vmem:[%s2681_s0 + $0x30] sm:$0xff]  ;;  %v2212_v62 = vsub.s32 2, %v256_v60  ;;  %v2214_v63 = vsub.s32 3, %v256_v60 }
  0x20   :  { %584 = vmatprep.subr.bf16.mxu0 %v2045_v20  ;;  %625 = vmatprep.subr.bf16.mxu1 %v2047_v21  ;;  %v2097_v37 = vld [vmem:[#allocation4 + $0x84] ss:$16 sps:$4 sm:$0xff]   ;;  %v2101_v38 = vld [vmem:[#allocation4 + $0x8c] ss:$16 sps:$4 sm:$0xff]   ;;  %v55_v39 = vpack.c.bf16 %v50_v36, %v49_v35  ;;  %v2105_v40 = vld [vmem:[#allocation4 + $0x80] ss:$16 sps:$4 sm:$0xff]  }
  0x21   :  { %148 = vmatprep.mubr.bf16.mxu0 %v2690_v1  ;;  %221 = vmatprep.mubr.bf16.mxu1 %v2690_v1  ;;  %v2113_v42 = vld [vmem:[#allocation4 + $0xa4] ss:$16 sps:$4 sm:$0xff]   ;;  %v2115_v43 = vld [vmem:[#allocation4 + $0xac] ss:$16 sps:$4 sm:$0xff]   ;;  %v2119_v44 = vld [vmem:[#allocation4 + $0xa0] ss:$16 sps:$4 sm:$0xff]  }
  0x22   :  { %v2123_v45 = vld [vmem:[#allocation4 + $0xa8] ss:$16 sps:$4 sm:$0xff]   ;;  %v2133_v48 = vld [vmem:[#allocation4 + $0xc4] ss:$16 sps:$4 sm:$0xff]   ;;  %v2135_v49 = vld [vmem:[#allocation4 + $0xcc] ss:$16 sps:$4 sm:$0xff]  }
  0x23   :  { %585 = vmatpush1.bf16.msra.mxu0 %v2049_v22  ;;  %626 = vmatpush1.bf16.msra.mxu1 %v2053_v23  ;;  %v52_v47 = vld [vmem:[%s2681_s0 + $0x38] sm:$0xff]  ;;  %v2141_v51 = vld [vmem:[#allocation4 + $0xc0] ss:$16 sps:$4 sm:$0xff]   ;;  %2696 = vst [vmem:[#allocation7_spill] sm:$0xff] %v2212_v62  ;;  %2697 = vst [vmem:[#allocation8_spill] sm:$0xff] %v2214_v63  ;;  %v2216_v0 = vsub.s32 0, %v256_v60 }
  0x24   :  { %586 = vmatprep.subr.bf16.mxu0 %v2065_v26  ;;  %627 = vmatprep.subr.bf16.mxu1 %v2067_v27  ;;  %v56_v50 = vpack.c.bf16 %v52_v47, %v51_v46  ;;  %v2143_v52 = vld [vmem:[#allocation4 + $0xc8] ss:$16 sps:$4 sm:$0xff]   ;;  %v2147_v53 = vld [vmem:[#allocation4 + $0xe4] ss:$16 sps:$4 sm:$0xff]   ;;  %v2149_v54 = vld [vmem:[#allocation4 + $0xec] ss:$16 sps:$4 sm:$0xff]  }
  0x25   :  { %v2155_v55 = vld [vmem:[#allocation4 + $0xe0] ss:$16 sps:$4 sm:$0xff]   ;;  %v2157_v56 = vld [vmem:[#allocation4 + $0xe8] ss:$16 sps:$4 sm:$0xff]   ;;  %2698 = vst [vmem:[#allocation9_spill] sm:$0xff] %v2216_v0  ;;  %v2218_v2 = vsub.s32 1, %v256_v60 }
  0x26   :  { %1617 = vmatmul.mubr.msk.bf16.gmra.mrb[4].mxu0 %vm77_vm2, %v54_v28  ;;  %1621 = vmatmul.mubr.msk.bf16.gmra.mrb[4].mxu1 %vm77_vm2, %v54_v28  ;;  %v2206_v58 = vld [vmem:[%s2684_s3] sm:$0xf] }
  0x27   :  { %587 = vmatpush1.bf16.msra.mxu0 %v2073_v29  ;;  %628 = vmatpush1.bf16.msra.mxu1 %v2075_v30  ;;  %v253_v59 = vld [vmem:[%s2685_s4] sm:$0xf]  ;;  %2699 = vst [vmem:[#allocation10_spill] sm:$0xff] %v2218_v2 }
  0x28   :  { %588 = vmatprep.subr.bf16.mxu0 %v2079_v31  ;;  %629 = vmatprep.subr.bf16.mxu1 %v2081_v32  ;;  %v283_v61 = vadd.f32 %v253_v59, %v2206_v58 }
  0x29   :  { %158 = vmatprep.mubr.bf16.mxu0 %v2690_v1  ;;  %231 = vmatprep.mubr.bf16.mxu1 %v2690_v1 }
  0x2a   :  { %v288_v3 = vrot.slane %v283_v61, %v2216_v0  ;;  %v296_v4 = vrot.slane %v283_v61, %v2212_v62  ;;  %v2225_v6 = vrot.slane %v283_v61, %v2218_v2  ;;  %v300_v8 = vrot.slane %v283_v61, %v2214_v63 }
  0x2b   :  { %589 = vmatpush1.bf16.msra.mxu0 %v2083_v33  ;;  %630 = vmatpush1.bf16.msra.mxu1 %v2085_v34 }
  0x2c   :  { %590 = vmatprep.subr.bf16.mxu0 %v2097_v37  ;;  %631 = vmatprep.subr.bf16.mxu1 %v2101_v38 }
  0x2e   :  { %1618 = vmatmul.mubr.msk.bf16.gmra.mrb[8].mxu0 %vm77_vm2, %v55_v39  ;;  %1622 = vmatmul.mubr.msk.bf16.gmra.mrb[8].mxu1 %vm77_vm2, %v55_v39 }
  0x2f   :  { %591 = vmatpush1.bf16.msra.mxu0 %v2105_v40  ;;  %632 = vmatpush1.bf16.msra.mxu1 %v2109_v41 }
  0x30   :  { %592 = vmatprep.subr.bf16.mxu0 %v2113_v42  ;;  %633 = vmatprep.subr.bf16.mxu1 %v2115_v43 }
  0x31   :  { %168 = vmatprep.mubr.bf16.mxu0 %v2690_v1  ;;  %241 = vmatprep.mubr.bf16.mxu1 %v2690_v1 }
  0x33   :  { %593 = vmatpush1.bf16.msra.mxu0 %v2119_v44  ;;  %634 = vmatpush1.bf16.msra.mxu1 %v2123_v45 }
  0x34   :  { %594 = vmatprep.subr.bf16.mxu0 %v2133_v48  ;;  %635 = vmatprep.subr.bf16.mxu1 %v2135_v49 }
  0x36   :  { %1619 = vmatmul.mubr.msk.bf16.gmra.mrb[12].mxu0 %vm77_vm2, %v56_v50  ;;  %1623 = vmatmul.mubr.msk.bf16.gmra.mrb[12].mxu1 %vm77_vm2, %v56_v50 }
  0x37   :  { %595 = vmatpush1.bf16.msra.mxu0 %v2141_v51  ;;  %636 = vmatpush1.bf16.msra.mxu1 %v2143_v52 }
  0x38   :  { %596 = vmatprep.subr.bf16.mxu0 %v2147_v53  ;;  %637 = vmatprep.subr.bf16.mxu1 %v2149_v54 }
  0x39   :  { %614 = vmatprep.mubr.bf16.mxu0 %v2690_v1  ;;  %655 = vmatprep.mubr.bf16.mxu1 %v2690_v1 }
  0x3b   :  { %597 = vmatpush1.bf16.msra.mxu0 %v2155_v55  ;;  %638 = vmatpush1.bf16.msra.mxu1 %v2157_v56 }
  0x3c   :  { %693 = vmatprep.subr.bf16.mxu0 %v2035_v15  ;;  %734 = vmatprep.subr.bf16.mxu1 %v2037_v17 }
  0x3e   :  { %615 = vmatmul.mubr.bf16.vlgmr.msra.gmra.mrb[16].mxu0 %v2690_v1  ;;  %656 = vmatmul.mubr.bf16.vlgmr.msra.gmra.mrb[16].mxu1 %v2690_v1 }
  0x3f   :  { %694 = vmatpush1.bf16.msra.mxu0 %v2039_v18  ;;  %735 = vmatpush1.bf16.msra.mxu1 %v2041_v19 }
  0x40   :  { %695 = vmatprep.subr.bf16.mxu0 %v2045_v20  ;;  %736 = vmatprep.subr.bf16.mxu1 %v2047_v21 }
  0x41   :  { %725 = vmatprep.mubr.bf16.mxu0 %v2690_v1  ;;  %766 = vmatprep.mubr.bf16.mxu1 %v2690_v1 }
  0x43   :  { %696 = vmatpush1.bf16.msra.mxu0 %v2049_v22  ;;  %737 = vmatpush1.bf16.msra.mxu1 %v2053_v23 }
  0x44   :  { %697 = vmatprep.subr.bf16.mxu0 %v2065_v26  ;;  %738 = vmatprep.subr.bf16.mxu1 %v2067_v27 }
  0x47   :  { %698 = vmatpush1.bf16.msra.mxu0 %v2073_v29  ;;  %739 = vmatpush1.bf16.msra.mxu1 %v2075_v30 }
  0x48   :  { %699 = vmatprep.subr.bf16.mxu0 %v2079_v31  ;;  %740 = vmatprep.subr.bf16.mxu1 %v2081_v32 }
  0x4b   :  { %700 = vmatpush1.bf16.msra.mxu0 %v2083_v33  ;;  %741 = vmatpush1.bf16.msra.mxu1 %v2085_v34 }
  0x4c   :  { %701 = vmatprep.subr.bf16.mxu0 %v2097_v37  ;;  %742 = vmatprep.subr.bf16.mxu1 %v2101_v38 }
  0x4f   :  { %702 = vmatpush1.bf16.msra.mxu0 %v2105_v40  ;;  %743 = vmatpush1.bf16.msra.mxu1 %v2109_v41 }
  0x50   :  { %703 = vmatprep.subr.bf16.mxu0 %v2113_v42  ;;  %744 = vmatprep.subr.bf16.mxu1 %v2115_v43 }
  0x53   :  { %704 = vmatpush1.bf16.msra.mxu0 %v2119_v44  ;;  %745 = vmatpush1.bf16.msra.mxu1 %v2123_v45 }
  0x54   :  { %705 = vmatprep.subr.bf16.mxu0 %v2133_v48  ;;  %746 = vmatprep.subr.bf16.mxu1 %v2135_v49 }
  0x57   :  { %706 = vmatpush1.bf16.msra.mxu0 %v2141_v51  ;;  %747 = vmatpush1.bf16.msra.mxu1 %v2143_v52 }
  0x58   :  { %707 = vmatprep.subr.bf16.mxu0 %v2147_v53  ;;  %748 = vmatprep.subr.bf16.mxu1 %v2149_v54 }
  0x5b   :  { %708 = vmatpush1.bf16.msra.mxu0 %v2155_v55  ;;  %749 = vmatpush1.bf16.msra.mxu1 %v2157_v56 }
  0x5c   :  { %804 = vmatprep.subr.bf16.mxu0 %v2035_v15  ;;  %845 = vmatprep.subr.bf16.mxu1 %v2037_v17 }
  0xf1   :  { %v2222_v5 = vpop.f32.mrb[0].mxu0  ;;  %v2227_v7 = vpop.f32.mrb[0].mxu1 }
  0xf2   :  { %v2230_v9 = vpop.f32.mrb[1].mxu0  ;;  %v2232_v10 = vpop.f32.mrb[1].mxu1 }
  0xf3   :  { %v144_v11 = vpop.f32.mrb[2].mxu0  ;;  %v217_v12 = vpop.f32.mrb[2].mxu1 }
  0xf4   :  { %v2234_v13 = vadd.f32 %v288_v3, %v144_v11  ;;  %v146_v14 = vpop.f32.mrb[3].mxu0  ;;  %v2236_v16 = vadd.f32 %v296_v4, %v217_v12  ;;  %v219_v24 = vpop.f32.mrb[3].mxu1 }
  0xf5   :  { %v2239_v25 = vadd.f32 %v2225_v6, %v146_v14  ;;  %v2241_v28 = vadd.f32 %v300_v8, %v219_v24 }
  0xf9   :  { %v150_v35 = vpop.f32.mrb[4].mxu0  ;;  %v223_v36 = vpop.f32.mrb[4].mxu1 }
  0xfa   :  { %v2243_v39 = vadd.f32 %v288_v3, %v150_v35  ;;  %v152_v46 = vpop.f32.mrb[5].mxu0  ;;  %v2245_v47 = vadd.f32 %v296_v4, %v223_v36  ;;  %v225_v50 = vpop.f32.mrb[5].mxu1 }
  0xfb   :  { %v2248_v57 = vadd.f32 %v2225_v6, %v152_v46  ;;  %v154_v59 = vpop.f32.mrb[6].mxu0  ;;  %v2250_v60 = vadd.f32 %v300_v8, %v225_v50  ;;  %v227_v61 = vpop.f32.mrb[6].mxu1 }
  0xfc   :  { %2700 = vst [vmem:[#allocation11_spill] sm:$0xff] %v2243_v39  ;;  %2701 = vst [vmem:[#allocation12_spill] sm:$0xff] %v2245_v47  ;;  %v2252_v11 = vadd.f32 %v288_v3, %v154_v59  ;;  %v156_v12 = vpop.f32.mrb[7].mxu0  ;;  %v2254_v14 = vadd.f32 %v296_v4, %v227_v61  ;;  %v229_v24 = vpop.f32.mrb[7].mxu1 }
  0xfd   :  { %2702 = vst [vmem:[#allocation13_spill] sm:$0xff] %v2248_v57  ;;  %2703 = vst [vmem:[#allocation14_spill] sm:$0xff] %v2250_v60  ;;  %v2257_v35 = vadd.f32 %v2225_v6, %v156_v12  ;;  %v2259_v1 = vadd.f32 %v300_v8, %v229_v24 }
  0xfe   :  { %2704 = vst [vmem:[#allocation15_spill] sm:$0xff] %v2252_v11  ;;  %2705 = vst [vmem:[#allocation16_spill] sm:$0xff] %v2254_v14 }
  0xff   :  { %2706 = vst [vmem:[#allocation17_spill] sm:$0xff] %v2257_v35  ;;  %2707 = vst [vmem:[#allocation18_spill] sm:$0xff] %v2259_v1 }
 0x101   :  { %v160_v36 = vpop.f32.mrb[8].mxu0  ;;  %v233_v47 = vpop.f32.mrb[8].mxu1 }
 0x102   :  { %v2261_v39 = vadd.f32 %v288_v3, %v160_v36  ;;  %v162_v46 = vpop.f32.mrb[9].mxu0  ;;  %v2263_v57 = vadd.f32 %v296_v4, %v233_v47  ;;  %v235_v50 = vpop.f32.mrb[9].mxu1 }
 0x103   :  { %v2266_v59 = vadd.f32 %v2225_v6, %v162_v46  ;;  %v164_v11 = vpop.f32.mrb[10].mxu0  ;;  %v2268_v61 = vadd.f32 %v300_v8, %v235_v50  ;;  %v237_v14 = vpop.f32.mrb[10].mxu1 }
 0x104   :  { %2708 = vst [vmem:[#allocation19_spill] sm:$0xff] %v2261_v39  ;;  %2709 = vst [vmem:[#allocation20_spill] sm:$0xff] %v2263_v57  ;;  %v2270_v60 = vadd.f32 %v288_v3, %v164_v11  ;;  %v166_v12 = vpop.f32.mrb[11].mxu0  ;;  %v2272_v24 = vadd.f32 %v296_v4, %v237_v14  ;;  %v239_v1 = vpop.f32.mrb[11].mxu1 }
 0x105   :  { %2710 = vst [vmem:[#allocation21_spill] sm:$0xff] %v2266_v59  ;;  %v2275_v36 = vadd.f32 %v2225_v6, %v166_v12  ;;  %v2277_v39 = vadd.f32 %v300_v8, %v239_v1  ;;  %v258_v12 = vrot.slane %v2206_v58, %v2216_v0  ;;  %v266_v1 = vrot.slane %v2206_v58, %v2212_v62 }
 0x106   :  { %2711 = vst [vmem:[#allocation22_spill] sm:$0xff] %v2270_v60  ;;  %2712 = vst [vmem:[#allocation23_spill] sm:$0xff] %v2272_v24 }
 0x107   :  { %2713 = vst [vmem:[#allocation24_spill] sm:$0xff] %v2277_v39  ;;  %v275_v0 = vadd.f32 %v258_v12, %v2222_v5 }
 0x109   :  { %v170_v47 = vpop.f32.mrb[12].mxu0  ;;  %v243_v57 = vpop.f32.mrb[12].mxu1 }
 0x10a   :  { %v2279_v35 = vadd.f32 %v288_v3, %v170_v47  ;;  %v172_v46 = vpop.f32.mrb[13].mxu0  ;;  %v2281_v59 = vadd.f32 %v296_v4, %v243_v57  ;;  %v245_v50 = vpop.f32.mrb[13].mxu1 }
 0x10b   :  { %v2284_v11 = vadd.f32 %v2225_v6, %v172_v46  ;;  %v174_v60 = vpop.f32.mrb[14].mxu0  ;;  %v2286_v14 = vadd.f32 %v300_v8, %v245_v50  ;;  %v247_v24 = vpop.f32.mrb[14].mxu1  ;;  %v262_v46 = vrot.slane %v2206_v58, %v2218_v2  ;;  %v270_v50 = vrot.slane %v2206_v58, %v2214_v63 }
 0x10c   :  { %2714 = vst [vmem:[#allocation25_spill] sm:$0xff] %v2279_v35  ;;  %2715 = vst [vmem:[#allocation26_spill] sm:$0xff] %v2281_v59  ;;  %v2292_v39 = vadd.f32 %v288_v3, %v174_v60  ;;  %v176_v47 = vpop.f32.mrb[15].mxu0  ;;  %v2294_v35 = vadd.f32 %v296_v4, %v247_v24  ;;  %v249_v57 = vpop.f32.mrb[15].mxu1  ;;  %v277_v3 = vadd.f32 %v266_v1, %v2227_v7 }
 0x10d   :  { %2716 = vst [vmem:[#allocation27_spill] sm:$0xff] %v2284_v11  ;;  %2717 = vst [vmem:[#allocation28_spill] sm:$0xff] %v2286_v14  ;;  %v2301_v14 = vadd.f32 %v2225_v6, %v176_v47  ;;  %v2303_v11 = vadd.f32 %v300_v8, %v249_v57  ;;  %v276_v60 = vadd.f32 %v262_v46, %v2230_v9 }
 0x10e   :  { %2718 = vst [vmem:[#allocation29_spill] sm:$0xff] %v2292_v39  ;;  %2719 = vst [vmem:[#allocation30_spill] sm:$0xff] %v2294_v35  ;;  %v278_v4 = vadd.f32 %v270_v50, %v2232_v10 }
 0x10f   :  { %2720 = vst [vmem:[#allocation31_spill] sm:$0xff] %v2303_v11 }
 0x111   :  { %v616_v24 = vpop.f32.mrb[16].mxu0  ;;  %v657_v62 = vpop.f32.mrb[16].mxu1 }
 0x112   :  { %v617_v35 = vadd.f32 %v616_v24, %v275_v0  ;;  %v658_v2 = vadd.f32 %v657_v62, %v277_v3  ;;  %v618_v39 = vpop.f32.mrb[17].mxu0  ;;  %v659_v59 = vpop.f32.mrb[17].mxu1 }
 0x113   :  { %v619_v58 = vadd.f32 %v618_v39, %v276_v60  ;;  %v660_v63 = vadd.f32 %v659_v59, %v278_v4  ;;  %v620_v6 = vpop.f32.mrb[18].mxu0  ;;  %v661_v47 = vpop.f32.mrb[18].mxu1  ;;  %v2721_v4 = vmov 0  }
 0x114   :  { %v1656_v8 = vmul.f32 -1.442695, %v617_v35  ;;  %v621_v57 = vpop.f32.mrb[19].mxu0  ;;  %v662_v11 = vpop.f32.mrb[19].mxu1  ;;  %v1658_v7 = vmul.f32 -1.442695, %v658_v2 }
 0x115   :  { %v1657_v5 = vmul.f32 -1.442695, %v619_v58 }
 0x116   :  { %1745 = vpow2.f32 %v1656_v8 }
 0x117   :  { %1747 = vpow2.f32 %v1657_v5 }
 0x118   :  { %1749 = vtanh.f32 %v660_v63 }
 0x119   :  { %1751 = vpow2.f32 %v1658_v7 }
 0x120   :  { %v1746_v9 = vpop.eup %1745 }
 0x121   :  { %v673_v12 = vadd.f32 1.0, %v1746_v9  ;;  %v1748_v10 = vpop.eup %1747 }
 0x122   :  { %v674_v62 = vadd.f32 1.0, %v1748_v10  ;;  %v1750_v0 = vpop.eup %1749 }
 0x123   :  { %1753 = vrcp.f32 %v673_v12  ;;  %v1752_v39 = vpop.eup %1751 }
 0x124   :  { %1755 = vrcp.f32 %v674_v62  ;;  %v675_v35 = vadd.f32 1.0, %v1752_v39 }
 0x126   :  { %1757 = vrcp.f32 %v675_v35 }
 0x12d   :  { %v1754_v59 = vpop.eup %1753 }
 0x12e   :  { %v684_v1 = vmul.f32 %v1754_v59, %v1750_v0  ;;  %v1756_v46 = vpop.eup %1755 }
 0x12f   :  { %v683_v50 = vmul.f32 0.0, %v1756_v46 }
 0x130   :  { %v1758_v2 = vpop.eup %1757 }
 0x131   :  { %v2309_v11 = vadd.f32 %v684_v1, %v683_v50 }
 0x133   :  { %1759 = vtanh.f32 %v2309_v11 }
 0x13d   :  { %v1760_v3 = vpop.eup %1759 }
 0x13e   :  { %v687_v63 = vmul.f32 %v1760_v3, %v1758_v2 }
 0x140   :  { %v688_v60 = vpack.c.bf16 %v687_v63, %v687_v63 }
 0x142   :  { %726 = vmatmul.mubr.bf16.vlgmr.msra.gmra.mrb[20].mxu0 %v688_v60  ;;  %767 = vmatmul.mubr.bf16.vlgmr.msra.gmra.mrb[20].mxu1 %v688_v60 }
 0x143   :  { %805 = vmatpush1.bf16.msra.mxu0 %v2039_v18  ;;  %846 = vmatpush1.bf16.msra.mxu1 %v2041_v19 }
 0x144   :  { %806 = vmatprep.subr.bf16.mxu0 %v2045_v20  ;;  %847 = vmatprep.subr.bf16.mxu1 %v2047_v21 }
 0x145   :  { %836 = vmatprep.mubr.bf16.mxu0 %v2721_v4  ;;  %877 = vmatprep.mubr.bf16.mxu1 %v2721_v4 }
 0x147   :  { %807 = vmatpush1.bf16.msra.mxu0 %v2049_v22  ;;  %848 = vmatpush1.bf16.msra.mxu1 %v2053_v23 }
 0x148   :  { %808 = vmatprep.subr.bf16.mxu0 %v2065_v26  ;;  %849 = vmatprep.subr.bf16.mxu1 %v2067_v27 }
 0x14b   :  { %809 = vmatpush1.bf16.msra.mxu0 %v2073_v29  ;;  %850 = vmatpush1.bf16.msra.mxu1 %v2075_v30 }
 0x14c   :  { %810 = vmatprep.subr.bf16.mxu0 %v2079_v31  ;;  %851 = vmatprep.subr.bf16.mxu1 %v2081_v32 }
 0x14f   :  { %811 = vmatpush1.bf16.msra.mxu0 %v2083_v33  ;;  %852 = vmatpush1.bf16.msra.mxu1 %v2085_v34 }
 0x150   :  { %812 = vmatprep.subr.bf16.mxu0 %v2097_v37  ;;  %853 = vmatprep.subr.bf16.mxu1 %v2101_v38 }
 0x153   :  { %813 = vmatpush1.bf16.msra.mxu0 %v2105_v40  ;;  %854 = vmatpush1.bf16.msra.mxu1 %v2109_v41 }
 0x154   :  { %814 = vmatprep.subr.bf16.mxu0 %v2113_v42  ;;  %855 = vmatprep.subr.bf16.mxu1 %v2115_v43 }
 0x157   :  { %815 = vmatpush1.bf16.msra.mxu0 %v2119_v44  ;;  %856 = vmatpush1.bf16.msra.mxu1 %v2123_v45 }
 0x158   :  { %816 = vmatprep.subr.bf16.mxu0 %v2133_v48  ;;  %857 = vmatprep.subr.bf16.mxu1 %v2135_v49 }
 0x15b   :  { %817 = vmatpush1.bf16.msra.mxu0 %v2141_v51  ;;  %858 = vmatpush1.bf16.msra.mxu1 %v2143_v52 }
 0x15c   :  { %818 = vmatprep.subr.bf16.mxu0 %v2147_v53  ;;  %859 = vmatprep.subr.bf16.mxu1 %v2149_v54 }
 0x15f   :  { %819 = vmatpush1.bf16.msra.mxu0 %v2155_v55  ;;  %860 = vmatpush1.bf16.msra.mxu1 %v2157_v56 }
 0x160   :  { %915 = vmatprep.subr.bf16.mxu0 %v2035_v15  ;;  %956 = vmatprep.subr.bf16.mxu1 %v2037_v17 }
 0x215   :  { %v727_v24 = vpop.f32.mrb[20].mxu0  ;;  %v768_v58 = vpop.f32.mrb[20].mxu1 }
 0x216   :  { %v728_v6 = vadd.f32 %v727_v24, %v2234_v13  ;;  %v769_v47 = vadd.f32 %v768_v58, %v2236_v16  ;;  %v729_v8 = vpop.f32.mrb[21].mxu0  ;;  %v770_v57 = vpop.f32.mrb[21].mxu1 }
 0x217   :  { %v730_v5 = vadd.f32 %v729_v8, %v2239_v25  ;;  %v771_v7 = vadd.f32 %v770_v57, %v2241_v28  ;;  %v731_v9 = vpop.f32.mrb[22].mxu0  ;;  %v772_v12 = vpop.f32.mrb[22].mxu1  ;;  %v2722_v57 = vld [vmem:[#allocation11_spill] sm:$0xff] }
 0x218   :  { %v1659_v10 = vmul.f32 -1.442695, %v728_v6  ;;  %v732_v62 = vpop.f32.mrb[23].mxu0  ;;  %v773_v0 = vpop.f32.mrb[23].mxu1  ;;  %v1661_v59 = vmul.f32 -1.442695, %v769_v47 }
 0x219   :  { %v1660_v39 = vmul.f32 -1.442695, %v730_v5  ;;  %v2724_v62 = vld [vmem:[#allocation13_spill] sm:$0xff] }
 0x21a   :  { %1761 = vpow2.f32 %v1659_v10 }
 0x21b   :  { %1763 = vpow2.f32 %v1660_v39  ;;  %v2725_v39 = vld [vmem:[#allocation14_spill] sm:$0xff] }
 0x21c   :  { %1765 = vtanh.f32 %v771_v7  ;;  %v2723_v7 = vld [vmem:[#allocation12_spill] sm:$0xff] }
 0x21d   :  { %1767 = vpow2.f32 %v1661_v59 }
 0x224   :  { %v1762_v1 = vpop.eup %1761 }
 0x225   :  { %v784_v46 = vadd.f32 1.0, %v1762_v1  ;;  %v1764_v13 = vpop.eup %1763 }
 0x226   :  { %v785_v16 = vadd.f32 1.0, %v1764_v13  ;;  %v1766_v25 = vpop.eup %1765 }
 0x227   :  { %1769 = vrcp.f32 %v784_v46  ;;  %v1768_v35 = vpop.eup %1767 }
 0x228   :  { %1771 = vrcp.f32 %v785_v16  ;;  %v786_v3 = vadd.f32 1.0, %v1768_v35 }
 0x22a   :  { %1773 = vrcp.f32 %v786_v3 }
 0x231   :  { %v1770_v28 = vpop.eup %1769 }
 0x232   :  { %v795_v50 = vmul.f32 %v1770_v28, %v1766_v25  ;;  %v1772_v2 = vpop.eup %1771 }
 0x233   :  { %v794_v63 = vmul.f32 %v1772_v2, %v2309_v11 }
 0x234   :  { %v1774_v24 = vpop.eup %1773 }
 0x235   :  { %v2351_v60 = vadd.f32 %v795_v50, %v794_v63 }
 0x237   :  { %1775 = vtanh.f32 %v2351_v60 }
 0x241   :  { %v1776_v58 = vpop.eup %1775 }
 0x242   :  { %v798_v6 = vmul.f32 %v1776_v58, %v1774_v24 }
 0x244   :  { %v799_v47 = vpack.c.bf16 %v798_v6, %v798_v6 }
 0x246   :  { %837 = vmatmul.mubr.bf16.vlgmr.msra.gmra.mrb[24].mxu0 %v799_v47  ;;  %878 = vmatmul.mubr.bf16.vlgmr.msra.gmra.mrb[24].mxu1 %v799_v47 }
 0x247   :  { %916 = vmatpush1.bf16.msra.mxu0 %v2039_v18  ;;  %957 = vmatpush1.bf16.msra.mxu1 %v2041_v19 }
 0x248   :  { %917 = vmatprep.subr.bf16.mxu0 %v2045_v20  ;;  %958 = vmatprep.subr.bf16.mxu1 %v2047_v21 }
 0x249   :  { %947 = vmatprep.mubr.bf16.mxu0 %v2721_v4  ;;  %988 = vmatprep.mubr.bf16.mxu1 %v2721_v4 }
 0x24b   :  { %918 = vmatpush1.bf16.msra.mxu0 %v2049_v22  ;;  %959 = vmatpush1.bf16.msra.mxu1 %v2053_v23 }
 0x24c   :  { %919 = vmatprep.subr.bf16.mxu0 %v2065_v26  ;;  %960 = vmatprep.subr.bf16.mxu1 %v2067_v27 }
 0x24f   :  { %920 = vmatpush1.bf16.msra.mxu0 %v2073_v29  ;;  %961 = vmatpush1.bf16.msra.mxu1 %v2075_v30 }
 0x250   :  { %921 = vmatprep.subr.bf16.mxu0 %v2079_v31  ;;  %962 = vmatprep.subr.bf16.mxu1 %v2081_v32 }
 0x253   :  { %922 = vmatpush1.bf16.msra.mxu0 %v2083_v33  ;;  %963 = vmatpush1.bf16.msra.mxu1 %v2085_v34 }
 0x254   :  { %923 = vmatprep.subr.bf16.mxu0 %v2097_v37  ;;  %964 = vmatprep.subr.bf16.mxu1 %v2101_v38 }
 0x257   :  { %924 = vmatpush1.bf16.msra.mxu0 %v2105_v40  ;;  %965 = vmatpush1.bf16.msra.mxu1 %v2109_v41 }
 0x258   :  { %925 = vmatprep.subr.bf16.mxu0 %v2113_v42  ;;  %966 = vmatprep.subr.bf16.mxu1 %v2115_v43 }
 0x25b   :  { %926 = vmatpush1.bf16.msra.mxu0 %v2119_v44  ;;  %967 = vmatpush1.bf16.msra.mxu1 %v2123_v45 }
 0x25c   :  { %927 = vmatprep.subr.bf16.mxu0 %v2133_v48  ;;  %968 = vmatprep.subr.bf16.mxu1 %v2135_v49 }
 0x25f   :  { %928 = vmatpush1.bf16.msra.mxu0 %v2141_v51  ;;  %969 = vmatpush1.bf16.msra.mxu1 %v2143_v52 }
 0x260   :  { %929 = vmatprep.subr.bf16.mxu0 %v2147_v53  ;;  %970 = vmatprep.subr.bf16.mxu1 %v2149_v54 }
 0x263   :  { %930 = vmatpush1.bf16.msra.mxu0 %v2155_v55  ;;  %971 = vmatpush1.bf16.msra.mxu1 %v2157_v56 }
 0x264   :  { %1026 = vmatprep.subr.bf16.mxu0 %v2035_v15  ;;  %1067 = vmatprep.subr.bf16.mxu1 %v2037_v17 }
 0x319   :  { %v838_v11 = vpop.f32.mrb[24].mxu0  ;;  %v879_v8 = vpop.f32.mrb[24].mxu1 }
 0x31a   :  { %v839_v5 = vadd.f32 %v838_v11, %v2722_v57  ;;  %v880_v9 = vadd.f32 %v879_v8, %v2723_v7  ;;  %v840_v12 = vpop.f32.mrb[25].mxu0  ;;  %v881_v10 = vpop.f32.mrb[25].mxu1 }
 0x31b   :  { %v841_v0 = vadd.f32 %v840_v12, %v2724_v62  ;;  %v882_v59 = vadd.f32 %v881_v10, %v2725_v39  ;;  %v842_v1 = vpop.f32.mrb[26].mxu0  ;;  %v883_v46 = vpop.f32.mrb[26].mxu1 }
 0x31c   :  { %v1662_v13 = vmul.f32 -1.442695, %v839_v5  ;;  %v843_v16 = vpop.f32.mrb[27].mxu0  ;;  %v884_v25 = vpop.f32.mrb[27].mxu1  ;;  %v1664_v28 = vmul.f32 -1.442695, %v880_v9 }
 0x31d   :  { %v1663_v35 = vmul.f32 -1.442695, %v841_v0  ;;  %v2726_v0 = vld [vmem:[#allocation15_spill] sm:$0xff]  ;;  %v2728_v16 = vld [vmem:[#allocation17_spill] sm:$0xff] }
 0x31e   :  { %1777 = vpow2.f32 %v1662_v13 }
 0x31f   :  { %1779 = vpow2.f32 %v1663_v35  ;;  %v2729_v35 = vld [vmem:[#allocation18_spill] sm:$0xff] }
 0x320   :  { %1781 = vtanh.f32 %v882_v59  ;;  %v2727_v59 = vld [vmem:[#allocation16_spill] sm:$0xff] }
 0x321   :  { %1783 = vpow2.f32 %v1664_v28 }
 0x328   :  { %v1778_v50 = vpop.eup %1777 }
 0x329   :  { %v895_v2 = vadd.f32 1.0, %v1778_v50  ;;  %v1780_v3 = vpop.eup %1779 }
 0x32a   :  { %v896_v63 = vadd.f32 1.0, %v1780_v3  ;;  %v1782_v24 = vpop.eup %1781 }
 0x32b   :  { %1785 = vrcp.f32 %v895_v2  ;;  %v1784_v58 = vpop.eup %1783 }
 0x32c   :  { %1787 = vrcp.f32 %v896_v63  ;;  %v897_v8 = vadd.f32 1.0, %v1784_v58 }
 0x32e   :  { %1789 = vrcp.f32 %v897_v8 }
 0x335   :  { %v1786_v6 = vpop.eup %1785 }
 0x336   :  { %v906_v47 = vmul.f32 %v1786_v6, %v1782_v24  ;;  %v1788_v11 = vpop.eup %1787 }
 0x337   :  { %v905_v57 = vmul.f32 %v1788_v11, %v2351_v60 }
 0x338   :  { %v1790_v7 = vpop.eup %1789 }
 0x339   :  { %v2393_v5 = vadd.f32 %v906_v47, %v905_v57 }
 0x33b   :  { %1791 = vtanh.f32 %v2393_v5 }
 0x345   :  { %v1792_v9 = vpop.eup %1791 }
 0x346   :  { %v909_v12 = vmul.f32 %v1792_v9, %v1790_v7 }
 0x348   :  { %v910_v10 = vpack.c.bf16 %v909_v12, %v909_v12 }
 0x34a   :  { %948 = vmatmul.mubr.bf16.vlgmr.msra.gmra.mrb[28].mxu0 %v910_v10  ;;  %989 = vmatmul.mubr.bf16.vlgmr.msra.gmra.mrb[28].mxu1 %v910_v10 }
 0x34b   :  { %1027 = vmatpush1.bf16.msra.mxu0 %v2039_v18  ;;  %1068 = vmatpush1.bf16.msra.mxu1 %v2041_v19 }
 0x34c   :  { %1028 = vmatprep.subr.bf16.mxu0 %v2045_v20  ;;  %1069 = vmatprep.subr.bf16.mxu1 %v2047_v21 }
 0x34d   :  { %1058 = vmatprep.mubr.bf16.mxu0 %v2721_v4  ;;  %1099 = vmatprep.mubr.bf16.mxu1 %v2721_v4 }
 0x34f   :  { %1029 = vmatpush1.bf16.msra.mxu0 %v2049_v22  ;;  %1070 = vmatpush1.bf16.msra.mxu1 %v2053_v23 }
 0x350   :  { %1030 = vmatprep.subr.bf16.mxu0 %v2065_v26  ;;  %1071 = vmatprep.subr.bf16.mxu1 %v2067_v27 }
 0x353   :  { %1031 = vmatpush1.bf16.msra.mxu0 %v2073_v29  ;;  %1072 = vmatpush1.bf16.msra.mxu1 %v2075_v30 }
 0x354   :  { %1032 = vmatprep.subr.bf16.mxu0 %v2079_v31  ;;  %1073 = vmatprep.subr.bf16.mxu1 %v2081_v32 }
 0x357   :  { %1033 = vmatpush1.bf16.msra.mxu0 %v2083_v33  ;;  %1074 = vmatpush1.bf16.msra.mxu1 %v2085_v34 }
 0x358   :  { %1034 = vmatprep.subr.bf16.mxu0 %v2097_v37  ;;  %1075 = vmatprep.subr.bf16.mxu1 %v2101_v38 }
 0x35b   :  { %1035 = vmatpush1.bf16.msra.mxu0 %v2105_v40  ;;  %1076 = vmatpush1.bf16.msra.mxu1 %v2109_v41 }
 0x35c   :  { %1036 = vmatprep.subr.bf16.mxu0 %v2113_v42  ;;  %1077 = vmatprep.subr.bf16.mxu1 %v2115_v43 }
 0x35f   :  { %1037 = vmatpush1.bf16.msra.mxu0 %v2119_v44  ;;  %1078 = vmatpush1.bf16.msra.mxu1 %v2123_v45 }
 0x360   :  { %1038 = vmatprep.subr.bf16.mxu0 %v2133_v48  ;;  %1079 = vmatprep.subr.bf16.mxu1 %v2135_v49 }
 0x363   :  { %1039 = vmatpush1.bf16.msra.mxu0 %v2141_v51  ;;  %1080 = vmatpush1.bf16.msra.mxu1 %v2143_v52 }
 0x364   :  { %1040 = vmatprep.subr.bf16.mxu0 %v2147_v53  ;;  %1081 = vmatprep.subr.bf16.mxu1 %v2149_v54 }
 0x367   :  { %1041 = vmatpush1.bf16.msra.mxu0 %v2155_v55  ;;  %1082 = vmatpush1.bf16.msra.mxu1 %v2157_v56 }
 0x368   :  { %1137 = vmatprep.subr.bf16.mxu0 %v2035_v15  ;;  %1178 = vmatprep.subr.bf16.mxu1 %v2037_v17 }
 0x41d   :  { %v949_v60 = vpop.f32.mrb[28].mxu0  ;;  %v990_v62 = vpop.f32.mrb[28].mxu1 }
 0x41e   :  { %v950_v39 = vadd.f32 %v949_v60, %v2726_v0  ;;  %v991_v1 = vadd.f32 %v990_v62, %v2727_v59  ;;  %v951_v46 = vpop.f32.mrb[29].mxu0  ;;  %v992_v13 = vpop.f32.mrb[29].mxu1 }
 0x41f   :  { %v952_v25 = vadd.f32 %v951_v46, %v2728_v16  ;;  %v993_v28 = vadd.f32 %v992_v13, %v2729_v35  ;;  %v953_v50 = vpop.f32.mrb[30].mxu0  ;;  %v994_v2 = vpop.f32.mrb[30].mxu1 }
 0x420   :  { %v1665_v3 = vmul.f32 -1.442695, %v950_v39  ;;  %v954_v63 = vpop.f32.mrb[31].mxu0  ;;  %v995_v24 = vpop.f32.mrb[31].mxu1  ;;  %v1667_v17 = vmul.f32 -1.442695, %v991_v1 }
 0x421   :  { %v1666_v15 = vmul.f32 -1.442695, %v952_v25 }
 0x422   :  { %1793 = vpow2.f32 %v1665_v3 }
 0x423   :  { %1795 = vpow2.f32 %v1666_v15 }
 0x424   :  { %1797 = vtanh.f32 %v993_v28 }
 0x425   :  { %1799 = vpow2.f32 %v1667_v17  ;;  %v2484_v17 = vld [vmem:[#allocation4] ss:$16 sps:$4 sm:$0xff]  }
 0x42c   :  { %v1794_v58 = vpop.eup %1793 }
 0x42d   :  { %v1006_v6 = vadd.f32 1.0, %v1794_v58  ;;  %v1796_v47 = vpop.eup %1795  ;;  %v2487_v58 = vld [vmem:[#allocation4 + $0x8] ss:$16 sps:$4 sm:$0xff]  }
 0x42e   :  { %v1007_v11 = vadd.f32 1.0, %v1796_v47  ;;  %v1798_v8 = vpop.eup %1797  ;;  %v2493_v47 = vld [vmem:[#allocation4 + $0x2c] ss:$16 sps:$4 sm:$0xff]  }
 0x42f   :  { %1801 = vrcp.f32 %v1006_v6  ;;  %v1800_v57 = vpop.eup %1799  ;;  %v2490_v6 = vld [vmem:[#allocation4 + $0x24] ss:$16 sps:$4 sm:$0xff]  }
 0x430   :  { %1803 = vrcp.f32 %v1007_v11  ;;  %v1008_v10 = vadd.f32 1.0, %v1800_v57  ;;  %v2498_v11 = vld [vmem:[#allocation4 + $0x20] ss:$16 sps:$4 sm:$0xff]   ;;  %v2504_v57 = vld [vmem:[#allocation4 + $0x44] ss:$16 sps:$4 sm:$0xff]  }
 0x432   :  { %1805 = vrcp.f32 %v1008_v10  ;;  %v2516_v10 = vld [vmem:[#allocation4 + $0x64] ss:$16 sps:$4 sm:$0xff]  }
 0x439   :  { %v1802_v7 = vpop.eup %1801 }
 0x43a   :  { %v1017_v9 = vmul.f32 %v1802_v7, %v1798_v8  ;;  %v1804_v12 = vpop.eup %1803  ;;  %v2501_v8 = vld [vmem:[#allocation4 + $0x28] ss:$16 sps:$4 sm:$0xff]   ;;  %v2507_v7 = vld [vmem:[#allocation4 + $0x4c] ss:$16 sps:$4 sm:$0xff]  }
 0x43b   :  { %v1016_v60 = vmul.f32 %v1804_v12, %v2393_v5  ;;  %v2513_v12 = vld [vmem:[#allocation4 + $0x48] ss:$16 sps:$4 sm:$0xff]  }
 0x43c   :  { %v1806_v0 = vpop.eup %1805 }
 0x43d   :  { %v2435_v62 = vadd.f32 %v1017_v9, %v1016_v60  ;;  %v2510_v9 = vld [vmem:[#allocation4 + $0x40] ss:$16 sps:$4 sm:$0xff]   ;;  %v2519_v60 = vld [vmem:[#allocation4 + $0x6c] ss:$16 sps:$4 sm:$0xff]  }
 0x43f   :  { %1807 = vtanh.f32 %v2435_v62 }
 0x449   :  { %v1808_v39 = vpop.eup %1807 }
 0x44a   :  { %v1020_v59 = vmul.f32 %v1808_v39, %v1806_v0  ;;  %v2525_v0 = vld [vmem:[#allocation4 + $0x68] ss:$16 sps:$4 sm:$0xff]   ;;  %v2528_v39 = vld [vmem:[#allocation4 + $0x84] ss:$16 sps:$4 sm:$0xff]  }
 0x44c   :  { %v1021_v1 = vpack.c.bf16 %v1020_v59, %v1020_v59  ;;  %v2531_v59 = vld [vmem:[#allocation4 + $0x8c] ss:$16 sps:$4 sm:$0xff]  }
 0x44e   :  { %1059 = vmatmul.mubr.bf16.vlgmr.msra.gmra.mrb[32].mxu0 %v1021_v1  ;;  %1100 = vmatmul.mubr.bf16.vlgmr.msra.gmra.mrb[32].mxu1 %v1021_v1  ;;  %v2534_v1 = vld [vmem:[#allocation4 + $0x80] ss:$16 sps:$4 sm:$0xff]  }
 0x44f   :  { %1138 = vmatpush1.bf16.msra.mxu0 %v2039_v18  ;;  %1179 = vmatpush1.bf16.msra.mxu1 %v2041_v19  ;;  %v2470_v18 = vld [vmem:[#allocation4 + $0x4] ss:$16 sps:$4 sm:$0xff]   ;;  %v2473_v19 = vld [vmem:[#allocation4 + $0xc] ss:$16 sps:$4 sm:$0xff]  }
 0x450   :  { %1139 = vmatprep.subr.bf16.mxu0 %v2045_v20  ;;  %1180 = vmatprep.subr.bf16.mxu1 %v2047_v21 }
 0x451   :  { %1169 = vmatprep.mubr.bf16.mxu0 %v2721_v4  ;;  %1210 = vmatprep.mubr.bf16.mxu1 %v2721_v4 }
 0x453   :  { %1140 = vmatpush1.bf16.msra.mxu0 %v2049_v22  ;;  %1181 = vmatpush1.bf16.msra.mxu1 %v2053_v23  ;;  %v2730_v22 = vld [vmem:[#allocation19_spill] sm:$0xff] }
 0x454   :  { %1141 = vmatprep.subr.bf16.mxu0 %v2065_v26  ;;  %1182 = vmatprep.subr.bf16.mxu1 %v2067_v27  ;;  %v2731_v26 = vld [vmem:[#allocation20_spill] sm:$0xff] }
 0x457   :  { %1142 = vmatpush1.bf16.msra.mxu0 %v2073_v29  ;;  %1183 = vmatpush1.bf16.msra.mxu1 %v2075_v30 }
 0x458   :  { %1143 = vmatprep.subr.bf16.mxu0 %v2079_v31  ;;  %1184 = vmatprep.subr.bf16.mxu1 %v2081_v32  ;;  %v2732_v31 = vld [vmem:[#allocation21_spill] sm:$0xff] }
 0x45b   :  { %1144 = vmatpush1.bf16.msra.mxu0 %v2083_v33  ;;  %1185 = vmatpush1.bf16.msra.mxu1 %v2085_v34 }
 0x45c   :  { %1145 = vmatprep.subr.bf16.mxu0 %v2097_v37  ;;  %1186 = vmatprep.subr.bf16.mxu1 %v2101_v38 }
 0x45f   :  { %1146 = vmatpush1.bf16.msra.mxu0 %v2105_v40  ;;  %1187 = vmatpush1.bf16.msra.mxu1 %v2109_v41 }
 0x460   :  { %1147 = vmatprep.subr.bf16.mxu0 %v2113_v42  ;;  %1188 = vmatprep.subr.bf16.mxu1 %v2115_v43 }
 0x463   :  { %1148 = vmatpush1.bf16.msra.mxu0 %v2119_v44  ;;  %1189 = vmatpush1.bf16.msra.mxu1 %v2123_v45 }
 0x464   :  { %1149 = vmatprep.subr.bf16.mxu0 %v2133_v48  ;;  %1190 = vmatprep.subr.bf16.mxu1 %v2135_v49 }
 0x467   :  { %1150 = vmatpush1.bf16.msra.mxu0 %v2141_v51  ;;  %1191 = vmatpush1.bf16.msra.mxu1 %v2143_v52 }
 0x468   :  { %1151 = vmatprep.subr.bf16.mxu0 %v2147_v53  ;;  %1192 = vmatprep.subr.bf16.mxu1 %v2149_v54 }
 0x46b   :  { %1152 = vmatpush1.bf16.msra.mxu0 %v2155_v55  ;;  %1193 = vmatpush1.bf16.msra.mxu1 %v2157_v56 }
 0x46c   :  { %1248 = vmatprep.subr.bf16.mxu0 %v2470_v18  ;;  %1289 = vmatprep.subr.bf16.mxu1 %v2473_v19 }
 0x521   :  { %v1060_v20 = vpop.f32.mrb[32].mxu0  ;;  %v1101_v21 = vpop.f32.mrb[32].mxu1 }
 0x522   :  { %v1061_v23 = vadd.f32 %v1060_v20, %v2730_v22  ;;  %v1102_v27 = vadd.f32 %v1101_v21, %v2731_v26  ;;  %v1062_v29 = vpop.f32.mrb[33].mxu0  ;;  %v1103_v30 = vpop.f32.mrb[33].mxu1  ;;  %v2537_v20 = vld [vmem:[#allocation4 + $0x88] ss:$16 sps:$4 sm:$0xff]   ;;  %v2540_v21 = vld [vmem:[#allocation4 + $0xa4] ss:$16 sps:$4 sm:$0xff]  }
 0x523   :  { %v1063_v32 = vadd.f32 %v1062_v29, %v2732_v31  ;;  %v1104_v33 = vadd.f32 %v1103_v30, %v2268_v61  ;;  %v1064_v34 = vpop.f32.mrb[34].mxu0  ;;  %v1105_v37 = vpop.f32.mrb[34].mxu1  ;;  %v2543_v22 = vld [vmem:[#allocation4 + $0xac] ss:$16 sps:$4 sm:$0xff]   ;;  %v2549_v26 = vld [vmem:[#allocation4 + $0xa8] ss:$16 sps:$4 sm:$0xff]  }
 0x524   :  { %v1668_v38 = vmul.f32 -1.442695, %v1061_v23  ;;  %v1065_v40 = vpop.f32.mrb[35].mxu0  ;;  %v1106_v41 = vpop.f32.mrb[35].mxu1  ;;  %v1670_v43 = vmul.f32 -1.442695, %v1102_v27 }
 0x525   :  { %v1669_v42 = vmul.f32 -1.442695, %v1063_v32  ;;  %v2546_v23 = vld [vmem:[#allocation4 + $0xa0] ss:$16 sps:$4 sm:$0xff]   ;;  %v2733_v29 = vld [vmem:[#allocation22_spill] sm:$0xff]  ;;  %v2735_v32 = vld [vmem:[#allocation24_spill] sm:$0xff] }
 0x526   :  { %1809 = vpow2.f32 %v1668_v38  ;;  %v2734_v30 = vld [vmem:[#allocation23_spill] sm:$0xff] }
 0x527   :  { %1811 = vpow2.f32 %v1669_v42 }
 0x528   :  { %1813 = vtanh.f32 %v1104_v33 }
 0x529   :  { %1815 = vpow2.f32 %v1670_v43 }
 0x530   :  { %v1810_v44 = vpop.eup %1809 }
 0x531   :  { %v1117_v45 = vadd.f32 1.0, %v1810_v44  ;;  %v1812_v5 = vpop.eup %1811 }
 0x532   :  { %v1118_v46 = vadd.f32 1.0, %v1812_v5  ;;  %v1814_v13 = vpop.eup %1813 }
 0x533   :  { %1817 = vrcp.f32 %v1117_v45  ;;  %v1816_v16 = vpop.eup %1815 }
 0x534   :  { %1819 = vrcp.f32 %v1118_v46  ;;  %v1119_v28 = vadd.f32 1.0, %v1816_v16 }
 0x536   :  { %1821 = vrcp.f32 %v1119_v28 }
 0x53d   :  { %v1818_v61 = vpop.eup %1817 }
 0x53e   :  { %v1128_v25 = vmul.f32 %v1818_v61, %v1814_v13  ;;  %v1820_v35 = vpop.eup %1819 }
 0x53f   :  { %v1127_v50 = vmul.f32 %v1820_v35, %v2435_v62  ;;  %v2522_v62 = vld [vmem:[#allocation4 + $0x60] ss:$16 sps:$4 sm:$0xff]  }
 0x540   :  { %v1822_v3 = vpop.eup %1821 }
 0x541   :  { %v2481_v2 = vadd.f32 %v1128_v25, %v1127_v50 }
 0x543   :  { %1823 = vtanh.f32 %v2481_v2 }
 0x54d   :  { %v1824_v63 = vpop.eup %1823 }
 0x54e   :  { %v1131_v24 = vmul.f32 %v1824_v63, %v1822_v3  ;;  %v2597_v63 = vld [vmem:[#allocation4 + $0xcc] ss:$16 sps:$4 sm:$0xff]  }
 0x550   :  { %v1132_v15 = vpack.c.bf16 %v1131_v24, %v1131_v24  ;;  %v2600_v24 = vld [vmem:[#allocation4 + $0xc0] ss:$16 sps:$4 sm:$0xff]  }
 0x552   :  { %1170 = vmatmul.mubr.bf16.vlgmr.msra.gmra.mrb[36].mxu0 %v1132_v15  ;;  %1211 = vmatmul.mubr.bf16.vlgmr.msra.gmra.mrb[36].mxu1 %v1132_v15  ;;  %v2603_v15 = vld [vmem:[#allocation4 + $0xc8] ss:$16 sps:$4 sm:$0xff]  }
 0x553   :  { %1249 = vmatpush1.bf16.msra.mxu0 %v2484_v17  ;;  %1290 = vmatpush1.bf16.msra.mxu1 %v2487_v58 }
 0x554   :  { %1250 = vmatprep.subr.bf16.mxu0 %v2490_v6  ;;  %1291 = vmatprep.subr.bf16.mxu1 %v2493_v47 }
 0x555   :  { %1280 = vmatprep.mubr.bf16.mxu0 %v2721_v4  ;;  %1321 = vmatprep.mubr.bf16.mxu1 %v2721_v4 }
 0x557   :  { %1251 = vmatpush1.bf16.msra.mxu0 %v2498_v11  ;;  %1292 = vmatpush1.bf16.msra.mxu1 %v2501_v8 }
 0x558   :  { %1252 = vmatprep.subr.bf16.mxu0 %v2504_v57  ;;  %1293 = vmatprep.subr.bf16.mxu1 %v2507_v7 }
 0x55b   :  { %1253 = vmatpush1.bf16.msra.mxu0 %v2510_v9  ;;  %1294 = vmatpush1.bf16.msra.mxu1 %v2513_v12 }
 0x55c   :  { %1254 = vmatprep.subr.bf16.mxu0 %v2516_v10  ;;  %1295 = vmatprep.subr.bf16.mxu1 %v2519_v60 }
 0x55f   :  { %1255 = vmatpush1.bf16.msra.mxu0 %v2522_v62  ;;  %1296 = vmatpush1.bf16.msra.mxu1 %v2525_v0 }
 0x560   :  { %1256 = vmatprep.subr.bf16.mxu0 %v2528_v39  ;;  %1297 = vmatprep.subr.bf16.mxu1 %v2531_v59 }
 0x563   :  { %1257 = vmatpush1.bf16.msra.mxu0 %v2534_v1  ;;  %1298 = vmatpush1.bf16.msra.mxu1 %v2537_v20 }
 0x564   :  { %1258 = vmatprep.subr.bf16.mxu0 %v2540_v21  ;;  %1299 = vmatprep.subr.bf16.mxu1 %v2543_v22 }
 0x567   :  { %1259 = vmatpush1.bf16.msra.mxu0 %v2546_v23  ;;  %1300 = vmatpush1.bf16.msra.mxu1 %v2549_v26 }
 0x568   :  { %1260 = vmatprep.subr.bf16.mxu0 %v2133_v48  ;;  %1301 = vmatprep.subr.bf16.mxu1 %v2135_v49 }
 0x56b   :  { %1261 = vmatpush1.bf16.msra.mxu0 %v2141_v51  ;;  %1302 = vmatpush1.bf16.msra.mxu1 %v2143_v52 }
 0x56c   :  { %1262 = vmatprep.subr.bf16.mxu0 %v2147_v53  ;;  %1303 = vmatprep.subr.bf16.mxu1 %v2149_v54 }
 0x56f   :  { %1263 = vmatpush1.bf16.msra.mxu0 %v2155_v55  ;;  %1304 = vmatpush1.bf16.msra.mxu1 %v2157_v56 }
 0x570   :  { %1359 = vmatprep.subr.bf16.mxu0 %v2470_v18  ;;  %1400 = vmatprep.subr.bf16.mxu1 %v2473_v19 }
 0x625   :  { %v1171_v27 = vpop.f32.mrb[36].mxu0  ;;  %v1212_v48 = vpop.f32.mrb[36].mxu1 }
 0x626   :  { %v1172_v49 = vadd.f32 %v1171_v27, %v2733_v29  ;;  %v1213_v51 = vadd.f32 %v1212_v48, %v2734_v30  ;;  %v1173_v31 = vpop.f32.mrb[37].mxu0  ;;  %v1214_v52 = vpop.f32.mrb[37].mxu1  ;;  %v2606_v27 = vld [vmem:[#allocation4 + $0xe4] ss:$16 sps:$4 sm:$0xff]   ;;  %v2609_v48 = vld [vmem:[#allocation4 + $0xec] ss:$16 sps:$4 sm:$0xff]  }
 0x627   :  { %v1174_v53 = vadd.f32 %v1173_v31, %v2275_v36  ;;  %v1215_v54 = vadd.f32 %v1214_v52, %v2735_v32  ;;  %v1175_v33 = vpop.f32.mrb[38].mxu0  ;;  %v1216_v55 = vpop.f32.mrb[38].mxu1  ;;  %v2612_v29 = vld [vmem:[#allocation4 + $0xe0] ss:$16 sps:$4 sm:$0xff]  }
 0x628   :  { %v1671_v34 = vmul.f32 -1.442695, %v1172_v49  ;;  %v1176_v56 = vpop.f32.mrb[39].mxu0  ;;  %v1217_v37 = vpop.f32.mrb[39].mxu1  ;;  %v1673_v40 = vmul.f32 -1.442695, %v1213_v51 }
 0x629   :  { %v1672_v38 = vmul.f32 -1.442695, %v1174_v53  ;;  %v2615_v49 = vld [vmem:[#allocation4 + $0xe8] ss:$16 sps:$4 sm:$0xff]   ;;  %v2736_v31 = vld [vmem:[#allocation25_spill] sm:$0xff]  ;;  %v2738_v55 = vld [vmem:[#allocation27_spill] sm:$0xff] }
 0x62a   :  { %1825 = vpow2.f32 %v1671_v34  ;;  %v2737_v53 = vld [vmem:[#allocation26_spill] sm:$0xff]  ;;  %v2739_v56 = vld [vmem:[#allocation28_spill] sm:$0xff] }
 0x62b   :  { %1827 = vpow2.f32 %v1672_v38 }
 0x62c   :  { %1829 = vtanh.f32 %v1215_v54 }
 0x62d   :  { %1831 = vpow2.f32 %v1673_v40 }
 0x634   :  { %v1826_v41 = vpop.eup %1825 }
 0x635   :  { %v1228_v42 = vadd.f32 1.0, %v1826_v41  ;;  %v1828_v43 = vpop.eup %1827 }
 0x636   :  { %v1229_v44 = vadd.f32 1.0, %v1828_v43  ;;  %v1830_v36 = vpop.eup %1829 }
 0x637   :  { %1833 = vrcp.f32 %v1228_v42  ;;  %v1832_v45 = vpop.eup %1831 }
 0x638   :  { %1835 = vrcp.f32 %v1229_v44  ;;  %v1230_v16 = vadd.f32 1.0, %v1832_v45 }
 0x63a   :  { %1837 = vrcp.f32 %v1230_v16 }
 0x641   :  { %v1834_v5 = vpop.eup %1833 }
 0x642   :  { %v1239_v46 = vmul.f32 %v1834_v5, %v1830_v36  ;;  %v1836_v13 = vpop.eup %1835 }
 0x643   :  { %v1238_v61 = vmul.f32 %v1836_v13, %v2481_v2  ;;  %v2594_v2 = vld [vmem:[#allocation4 + $0xc4] ss:$16 sps:$4 sm:$0xff]  }
 0x644   :  { %v1838_v35 = vpop.eup %1837 }
 0x645   :  { %v2567_v25 = vadd.f32 %v1239_v46, %v1238_v61 }
 0x647   :  { %1839 = vtanh.f32 %v2567_v25 }
 0x651   :  { %v1840_v28 = vpop.eup %1839 }
 0x652   :  { %v1242_v50 = vmul.f32 %v1840_v28, %v1838_v35 }
 0x654   :  { %v1243_v3 = vpack.c.bf16 %v1242_v50, %v1242_v50 }
 0x656   :  { %1281 = vmatmul.mubr.bf16.vlgmr.msra.gmra.mrb[40].mxu0 %v1243_v3  ;;  %1322 = vmatmul.mubr.bf16.vlgmr.msra.gmra.mrb[40].mxu1 %v1243_v3 }
 0x657   :  { %1360 = vmatpush1.bf16.msra.mxu0 %v2484_v17  ;;  %1401 = vmatpush1.bf16.msra.mxu1 %v2487_v58 }
 0x658   :  { %1361 = vmatprep.subr.bf16.mxu0 %v2490_v6  ;;  %1402 = vmatprep.subr.bf16.mxu1 %v2493_v47 }
 0x659   :  { %1391 = vmatprep.mubr.bf16.mxu0 %v2721_v4  ;;  %1432 = vmatprep.mubr.bf16.mxu1 %v2721_v4 }
 0x65b   :  { %1362 = vmatpush1.bf16.msra.mxu0 %v2498_v11  ;;  %1403 = vmatpush1.bf16.msra.mxu1 %v2501_v8 }
 0x65c   :  { %1363 = vmatprep.subr.bf16.mxu0 %v2504_v57  ;;  %1404 = vmatprep.subr.bf16.mxu1 %v2507_v7 }
 0x65f   :  { %1364 = vmatpush1.bf16.msra.mxu0 %v2510_v9  ;;  %1405 = vmatpush1.bf16.msra.mxu1 %v2513_v12 }
 0x660   :  { %1365 = vmatprep.subr.bf16.mxu0 %v2516_v10  ;;  %1406 = vmatprep.subr.bf16.mxu1 %v2519_v60 }
 0x663   :  { %1366 = vmatpush1.bf16.msra.mxu0 %v2522_v62  ;;  %1407 = vmatpush1.bf16.msra.mxu1 %v2525_v0 }
 0x664   :  { %1367 = vmatprep.subr.bf16.mxu0 %v2528_v39  ;;  %1408 = vmatprep.subr.bf16.mxu1 %v2531_v59 }
 0x667   :  { %1368 = vmatpush1.bf16.msra.mxu0 %v2534_v1  ;;  %1409 = vmatpush1.bf16.msra.mxu1 %v2537_v20 }
 0x668   :  { %1369 = vmatprep.subr.bf16.mxu0 %v2540_v21  ;;  %1410 = vmatprep.subr.bf16.mxu1 %v2543_v22 }
 0x66b   :  { %1370 = vmatpush1.bf16.msra.mxu0 %v2546_v23  ;;  %1411 = vmatpush1.bf16.msra.mxu1 %v2549_v26 }
 0x66c   :  { %1371 = vmatprep.subr.bf16.mxu0 %v2594_v2  ;;  %1412 = vmatprep.subr.bf16.mxu1 %v2597_v63 }
 0x66f   :  { %1372 = vmatpush1.bf16.msra.mxu0 %v2600_v24  ;;  %1413 = vmatpush1.bf16.msra.mxu1 %v2603_v15 }
 0x670   :  { %1373 = vmatprep.subr.bf16.mxu0 %v2606_v27  ;;  %1414 = vmatprep.subr.bf16.mxu1 %v2609_v48 }
 0x673   :  { %1374 = vmatpush1.bf16.msra.mxu0 %v2612_v29  ;;  %1415 = vmatpush1.bf16.msra.mxu1 %v2615_v49 }
 0x674   :  { %1470 = vmatprep.subr.bf16.mxu0 %v2470_v18  ;;  %1511 = vmatprep.subr.bf16.mxu1 %v2473_v19 }
 0x729   :  { %v1282_v30 = vpop.f32.mrb[40].mxu0  ;;  %v1323_v51 = vpop.f32.mrb[40].mxu1 }
 0x72a   :  { %v1283_v52 = vadd.f32 %v1282_v30, %v2736_v31  ;;  %v1324_v32 = vadd.f32 %v1323_v51, %v2737_v53  ;;  %v1284_v54 = vpop.f32.mrb[41].mxu0  ;;  %v1325_v33 = vpop.f32.mrb[41].mxu1 }
 0x72b   :  { %v1285_v34 = vadd.f32 %v1284_v54, %v2738_v55  ;;  %v1326_v37 = vadd.f32 %v1325_v33, %v2739_v56  ;;  %v1286_v38 = vpop.f32.mrb[42].mxu0  ;;  %v1327_v40 = vpop.f32.mrb[42].mxu1  ;;  %v2743_v54 = vld [vmem:[#allocation9_spill] sm:$0xff]  ;;  %v2744_v55 = vld [vmem:[#allocation10_spill] sm:$0xff] }
 0x72c   :  { %v1674_v41 = vmul.f32 -1.442695, %v1283_v52  ;;  %v1287_v42 = vpop.f32.mrb[43].mxu0  ;;  %v1328_v43 = vpop.f32.mrb[43].mxu1  ;;  %v1676_v19 = vmul.f32 -1.442695, %v1324_v32 }
 0x72d   :  { %v1675_v18 = vmul.f32 -1.442695, %v1285_v34  ;;  %v1925_v32 = vld [vmem:[%s2685_s4] sm:$0xf] }
 0x72e   :  { %1841 = vpow2.f32 %v1674_v41  ;;  %v365_v33 = vrot.slane %v1925_v32, %v2743_v54  ;;  %v369_v34 = vrot.slane %v1925_v32, %v2744_v55 }
 0x72f   :  { %1843 = vpow2.f32 %v1675_v18 }
 0x730   :  { %1845 = vtanh.f32 %v1326_v37 }
 0x731   :  { %1847 = vpow2.f32 %v1676_v19 }
 0x738   :  { %v1842_v44 = vpop.eup %1841 }
 0x739   :  { %v1339_v36 = vadd.f32 1.0, %v1842_v44  ;;  %v1844_v45 = vpop.eup %1843 }
 0x73a   :  { %v1340_v5 = vadd.f32 1.0, %v1844_v45  ;;  %v1846_v46 = vpop.eup %1845 }
 0x73b   :  { %1849 = vrcp.f32 %v1339_v36  ;;  %v1848_v13 = vpop.eup %1847 }
 0x73c   :  { %1851 = vrcp.f32 %v1340_v5  ;;  %v1341_v28 = vadd.f32 1.0, %v1848_v13  ;;  %v2745_v5 = vld [vmem:[#allocation7_spill] sm:$0xff]  ;;  %v2746_v13 = vld [vmem:[#allocation8_spill] sm:$0xff] }
 0x73e   :  { %1853 = vrcp.f32 %v1341_v28 }
 0x745   :  { %v1850_v16 = vpop.eup %1849 }
 0x746   :  { %v1350_v61 = vmul.f32 %v1850_v16, %v1846_v46  ;;  %v1852_v35 = vpop.eup %1851  ;;  %v373_v46 = vrot.slane %v1925_v32, %v2745_v5  ;;  %v377_v16 = vrot.slane %v1925_v32, %v2746_v13 }
 0x747   :  { %v1349_v50 = vmul.f32 %v1852_v35, %v2567_v25 }
 0x748   :  { %v1854_v30 = vpop.eup %1853 }
 0x749   :  { %v2625_v3 = vadd.f32 %v1350_v61, %v1349_v50 }
 0x74b   :  { %1855 = vtanh.f32 %v2625_v3 }
 0x755   :  { %v1856_v51 = vpop.eup %1855 }
 0x756   :  { %v1353_v31 = vmul.f32 %v1856_v51, %v1854_v30 }
 0x758   :  { %v1354_v52 = vpack.c.bf16 %v1353_v31, %v1353_v31 }
 0x75a   :  { %1392 = vmatmul.mubr.bf16.vlgmr.msra.gmra.mrb[44].mxu0 %v1354_v52  ;;  %1433 = vmatmul.mubr.bf16.vlgmr.msra.gmra.mrb[44].mxu1 %v1354_v52 }
 0x75b   :  { %1471 = vmatpush1.bf16.msra.mxu0 %v2484_v17  ;;  %1512 = vmatpush1.bf16.msra.mxu1 %v2487_v58  ;;  %v2740_v58 = vld [vmem:[#allocation29_spill] sm:$0xff] }
 0x75c   :  { %1472 = vmatprep.subr.bf16.mxu0 %v2490_v6  ;;  %1513 = vmatprep.subr.bf16.mxu1 %v2493_v47  ;;  %v2741_v47 = vld [vmem:[#allocation30_spill] sm:$0xff] }
 0x75d   :  { %1502 = vmatprep.mubr.bf16.mxu0 %v2721_v4  ;;  %1543 = vmatprep.mubr.bf16.mxu1 %v2721_v4 }
 0x75f   :  { %1473 = vmatpush1.bf16.msra.mxu0 %v2498_v11  ;;  %1514 = vmatpush1.bf16.msra.mxu1 %v2501_v8 }
 0x760   :  { %1474 = vmatprep.subr.bf16.mxu0 %v2504_v57  ;;  %1515 = vmatprep.subr.bf16.mxu1 %v2507_v7 }
 0x763   :  { %1475 = vmatpush1.bf16.msra.mxu0 %v2510_v9  ;;  %1516 = vmatpush1.bf16.msra.mxu1 %v2513_v12  ;;  %v2742_v9 = vld [vmem:[#allocation31_spill] sm:$0xff] }
 0x764   :  { %1476 = vmatprep.subr.bf16.mxu0 %v2516_v10  ;;  %1517 = vmatprep.subr.bf16.mxu1 %v2519_v60 }
 0x767   :  { %1477 = vmatpush1.bf16.msra.mxu0 %v2522_v62  ;;  %1518 = vmatpush1.bf16.msra.mxu1 %v2525_v0 }
 0x768   :  { %1478 = vmatprep.subr.bf16.mxu0 %v2528_v39  ;;  %1519 = vmatprep.subr.bf16.mxu1 %v2531_v59 }
 0x76b   :  { %1479 = vmatpush1.bf16.msra.mxu0 %v2534_v1  ;;  %1520 = vmatpush1.bf16.msra.mxu1 %v2537_v20 }
 0x76c   :  { %1480 = vmatprep.subr.bf16.mxu0 %v2540_v21  ;;  %1521 = vmatprep.subr.bf16.mxu1 %v2543_v22 }
 0x76f   :  { %1481 = vmatpush1.bf16.msra.mxu0 %v2546_v23  ;;  %1522 = vmatpush1.bf16.msra.mxu1 %v2549_v26 }
 0x770   :  { %1482 = vmatprep.subr.bf16.mxu0 %v2594_v2  ;;  %1523 = vmatprep.subr.bf16.mxu1 %v2597_v63 }
 0x773   :  { %1483 = vmatpush1.bf16.msra.mxu0 %v2600_v24  ;;  %1524 = vmatpush1.bf16.msra.mxu1 %v2603_v15 }
 0x774   :  { %1484 = vmatprep.subr.bf16.mxu0 %v2606_v27  ;;  %1525 = vmatprep.subr.bf16.mxu1 %v2609_v48 }
 0x777   :  { %1485 = vmatpush1.bf16.msra.mxu0 %v2612_v29  ;;  %1526 = vmatpush1.bf16.msra.mxu1 %v2615_v49 }
 0x82d   :  { %v1393_v4 = vpop.f32.mrb[44].mxu0  ;;  %v1434_v17 = vpop.f32.mrb[44].mxu1 }
 0x82e   :  { %v1394_v6 = vadd.f32 %v1393_v4, %v2740_v58  ;;  %v1435_v11 = vadd.f32 %v1434_v17, %v2741_v47  ;;  %v1395_v8 = vpop.f32.mrb[45].mxu0  ;;  %v1436_v57 = vpop.f32.mrb[45].mxu1 }
 0x82f   :  { %v1396_v7 = vadd.f32 %v1395_v8, %v2301_v14  ;;  %v1437_v12 = vadd.f32 %v1436_v57, %v2742_v9  ;;  %v1397_v10 = vpop.f32.mrb[46].mxu0  ;;  %v1438_v60 = vpop.f32.mrb[46].mxu1 }
 0x830   :  { %v1677_v62 = vmul.f32 -1.442695, %v1394_v6  ;;  %v1398_v0 = vpop.f32.mrb[47].mxu0  ;;  %v1439_v39 = vpop.f32.mrb[47].mxu1  ;;  %v1679_v1 = vmul.f32 -1.442695, %v1435_v11 }
 0x831   :  { %v1678_v59 = vmul.f32 -1.442695, %v1396_v7  ;;  %v1683_v7 = vld [vmem:[%s2686_s5] ss:$0 sm:$0xff] }
 0x832   :  { %1857 = vpow2.f32 %v1677_v62  ;;  %v1684_v10 = vld [vmem:[#allocation3] ss:$0 sm:$0xff] }
 0x833   :  { %1859 = vpow2.f32 %v1678_v59 }
 0x834   :  { %1861 = vtanh.f32 %v1437_v12 }
 0x835   :  { %1863 = vpow2.f32 %v1679_v1 }
 0x83c   :  { %v1858_v20 = vpop.eup %1857 }
 0x83d   :  { %v1450_v21 = vadd.f32 1.0, %v1858_v20  ;;  %v1860_v22 = vpop.eup %1859 }
 0x83e   :  { %v1451_v23 = vadd.f32 1.0, %v1860_v22  ;;  %v1862_v14 = vpop.eup %1861 }
 0x83f   :  { %1865 = vrcp.f32 %v1450_v21  ;;  %v1864_v26 = vpop.eup %1863 }
 0x840   :  { %1867 = vrcp.f32 %v1451_v23  ;;  %v1452_v24 = vadd.f32 1.0, %v1864_v26 }
 0x842   :  { %1869 = vrcp.f32 %v1452_v24 }
 0x849   :  { %v1866_v25 = vpop.eup %1865 }
 0x84a   :  { %v1461_v2 = vmul.f32 %v1866_v25, %v1862_v14  ;;  %v1868_v63 = vpop.eup %1867 }
 0x84b   :  { %v1460_v15 = vmul.f32 %v1868_v63, %v2625_v3 }
 0x84c   :  { %v1870_v48 = vpop.eup %1869 }
 0x84d   :  { %v1462_v27 = vadd.f32 %v1461_v2, %v1460_v15 }
 0x84f   :  { %1871 = vtanh.f32 %v1462_v27 }
 0x859   :  { %v1872_v29 = vpop.eup %1871 }
 0x85a   :  { %v1464_v49 = vmul.f32 %v1872_v29, %v1870_v48 }
 0x85c   :  { %v1465_v53 = vpack.c.bf16 %v1464_v49, %v1464_v49 }
 0x85e   :  { %1503 = vmatmul.mubr.bf16.vlgmr.msra.gmra.mrb[48].mxu0 %v1465_v53  ;;  %1544 = vmatmul.mubr.bf16.vlgmr.msra.gmra.mrb[48].mxu1 %v1465_v53 }
 0x931   :  { %v1504_v56 = vpop.f32.mrb[48].mxu0  ;;  %v1545_v37 = vpop.f32.mrb[48].mxu1 }
 0x932   :  { %v1505_v38 = vadd.f32 %v1504_v56, %v365_v33  ;;  %v1506_v40 = vpop.f32.mrb[49].mxu0  ;;  %v1547_v41 = vpop.f32.mrb[49].mxu1  ;;  %v1546_v61 = vadd.f32 %v1545_v37, %v373_v46 }
 0x933   :  { %v1507_v42 = vadd.f32 %v1506_v40, %v369_v34  ;;  %v1508_v43 = vpop.f32.mrb[50].mxu0  ;;  %v1549_v18 = vpop.f32.mrb[50].mxu1  ;;  %v1548_v35 = vadd.f32 %v1547_v41, %v377_v16 }
 0x934   :  { %v1680_v19 = vmul.f32 -1.442695, %v1505_v38  ;;  %v1509_v44 = vpop.f32.mrb[51].mxu0  ;;  %v1550_v36 = vpop.f32.mrb[51].mxu1  ;;  %v1682_v28 = vmul.f32 -1.442695, %v1546_v61 }
 0x935   :  { %v1681_v45 = vmul.f32 -1.442695, %v1507_v42 }
 0x936   :  { %1873 = vpow2.f32 %v1680_v19 }
 0x937   :  { %1875 = vpow2.f32 %v1681_v45 }
 0x938   :  { %1877 = vtanh.f32 %v1548_v35 }
 0x939   :  { %1879 = vpow2.f32 %v1682_v28 }
 0x940   :  { %v1874_v50 = vpop.eup %1873 }
 0x941   :  { %v1561_v3 = vadd.f32 1.0, %v1874_v50  ;;  %v1876_v30 = vpop.eup %1875 }
 0x942   :  { %v1562_v51 = vadd.f32 1.0, %v1876_v30  ;;  %v1878_v31 = vpop.eup %1877 }
 0x943   :  { %1881 = vrcp.f32 %v1561_v3  ;;  %v1880_v52 = vpop.eup %1879 }
 0x944   :  { %1883 = vrcp.f32 %v1562_v51  ;;  %v1563_v6 = vadd.f32 1.0, %v1880_v52 }
 0x946   :  { %1885 = vrcp.f32 %v1563_v6 }
 0x94d   :  { %v1882_v4 = vpop.eup %1881 }
 0x94e   :  { %v1572_v17 = vmul.f32 %v1882_v4, %v1878_v31  ;;  %v1884_v58 = vpop.eup %1883 }
 0x94f   :  { %v1571_v47 = vmul.f32 %v1884_v58, %v1462_v27 }
 0x950   :  { %v1886_v8 = vpop.eup %1885 }
 0x951   :  { %v1573_v11 = vadd.f32 %v1572_v17, %v1571_v47 }
 0x953   :  { %1887 = vtanh.f32 %v1573_v11 }
 0x95d   :  { %v1888_v57 = vpop.eup %1887 }
 0x95e   :  { %v1575_v9 = vmul.f32 %v1888_v57, %v1886_v8 }
 0x960   :  { %v1583_v12 = vmul.f32 %v1683_v7, %v1575_v9 }
 0x962   :  { %1584 = vadd.xlane.f32.xlu0 %v1583_v12 }
 0x9ef   :  { %v1585_v60 = vpop.xlane.xlu0 %1584 }
 0x9f0   :  { %v1593_v62 = vadd.f32 %v1684_v10, %v1585_v60 }
 0x9f2   :  { %1595 = vst.msk [vmem:[%s2689_s8] sm:$0xff] %vm1594_vm3, %v1593_v62  ;;  %v1685_v0 = vmul.f32 -1.442695, %v1593_v62 }
 0x9f4   :  { %1889 = vpow2.f32 %v1685_v0 }
 0x9fe   :  { %v1890_v39 = vpop.eup %1889 }
 0x9ff   :  { %v1599_v59 = vadd.f32 1.0, %v1890_v39 }
 0xa01   :  { %1891 = vrcp.f32 %v1599_v59 }
 0xa0b   :  { %v1892_v1 = vpop.eup %1891 }
 0xa0c   :  { %1602 = vst.msk [vmem:[%s2688_s7] sm:$0xff] %vm1594_vm3, %v1892_v1 }
 0xa0d   :  { %1611 = vsyncpa [#allocation5], 1 }

</bundles_post_ra>
